<compile_context>
chip_gen: v7x
topology: tpu7x:2x2x1
jax: 0.10.0
libtpu: 0.0.40
codegen_flags: <defaults>
</compile_context>

<pallas_src>
import functools

import jax
import jax.numpy as jnp
import numpy as np
from jax.experimental import pallas as pl
from jax.experimental.pallas import tpu as pltpu

LN_EPS = 1e-5    # nn.LayerNorm default eps
L2_EPS = 1e-12   # F.normalize default eps
LANE = 128


def _round_up(x, m):
    return (x + m - 1) // m * m


def _pick_tile(n, candidates):
    for c in candidates:
        if n % c == 0:
            return c
    return n


def _vmem_limit(est_bytes):
    # Explicit scoped-VMEM budget: 2x headroom over the estimated working set,
    # clamped to [16 MiB, 48 MiB] (stays under v7x's 64 MiB physical VMEM
    # while lifting v5e's 16 MiB default when slabs grow).
    return int(min(max(2 * est_bytes, 16 << 20), 48 << 20))


# ------------------------------ kernels ------------------------------

def tower_kernel(ln_dims, x_ref, w_ref, v_ref, emb_ref):
    """TowerBlock (mask=None path) + F.normalize on zero-padded operands.

    x_ref:   (tile_rows, Dp) f32 activations; padded columns are 0.
    w_ref:   (3, Dp, Dp) weight slab (f32 or bf16), zero-padded.
    v_ref:   (16, Dp) f32 vector slab; rows 3l/3l+1/3l+2 = bias/gamma/beta of
             layer l, zero-padded (so padded columns stay exactly 0 after LN).
    ln_dims: true LayerNorm width of each layer (compile-time python ints).
    """
    h = x_ref[...]
    n_layers = len(ln_dims)
    for l in range(n_layers):
        w = w_ref[l]                               # (Dp, Dp)
        b = v_ref[3 * l: 3 * l + 1, :]             # (1, Dp)
        g = v_ref[3 * l + 1: 3 * l + 2, :]
        beta = v_ref[3 * l + 2: 3 * l + 3, :]

        # MXU matmul; bf16 operands (if enabled) accumulate in f32.
        h = jnp.dot(h.astype(w.dtype), w, preferred_element_type=jnp.float32) + b

        # Fused LayerNorm stats: padded columns are 0, so the sums only see
        # the true features; divide by the true width, var = E[x^2] - mu^2.
        inv_d = 1.0 / float(ln_dims[l])
        s1 = jnp.sum(h, axis=-1, keepdims=True)
        s2 = jnp.sum(h * h, axis=-1, keepdims=True)
        mu = s1 * inv_d
        var = s2 * inv_d - mu * mu
        h = (h - mu) * jax.lax.rsqrt(var + LN_EPS) * g + beta

        if l < n_layers - 1:
            h = jnp.maximum(h, 0.0)                # ReLU (Dropout = eval identity)

    # F.normalize(dim=-1): x / max(||x||, eps) == x * rsqrt(max(sum x^2, eps^2))
    ss = jnp.sum(h * h, axis=-1, keepdims=True)
    emb_ref[...] = h * jax.lax.rsqrt(jnp.maximum(ss, L2_EPS * L2_EPS))
    # TODO(synk): the MultiheadAttention branch only runs when a mask is
    # passed; forward() is exercised with mask=None, so it is omitted.


def sim_kernel(q_ref, k_ref, invt_ref, sim_ref):
    """sim tile = (q_emb * 1/T) @ k_emb.T as an NT contraction (no .T)."""
    q = q_ref[...] * invt_ref[0]
    sim_ref[...] = jax.lax.dot_general(
        q, k_ref[...],
        dimension_numbers=(((1,), (1,)), ((), ())),
        preferred_element_type=jnp.float32)


# ------------------------------ wrapper ------------------------------

def _pack_tower_params(params, d_pad, w_dtype):
    """Pack 12 tower tensors into one weight slab + one vector slab."""
    (W1, b1, g1, B1, W2, b2, g2, B2, Wo, bo, go, Bo) = params
    weights = (W1, W2, Wo)
    vectors = (b1, g1, B1, b2, g2, B2, bo, go, Bo)   # rows 3l, 3l+1, 3l+2

    wslab = jnp.zeros((3, d_pad, d_pad), w_dtype)
    for i, W in enumerate(weights):
        wslab = wslab.at[i, :W.shape[0], :W.shape[1]].set(W.astype(w_dtype))

    vslab = jnp.zeros((16, d_pad), jnp.float32)
    for i, v in enumerate(vectors):
        row = jnp.asarray(v, jnp.float32).reshape(-1)
        vslab = vslab.at[i, :row.shape[0]].set(row)
    return wslab, vslab


def semantic_retriever_forward(query, key, q_params, k_params, temperature,
                               *, weight_dtype=jnp.bfloat16):
    hidden_dim = q_params[0].shape[1]
    emb_dim = q_params[8].shape[1]            # Wo: (hidden, embedding)
    q_in = q_params[0].shape[0]
    k_in = k_params[0].shape[0]
    Nq, Nk = query.shape[0], key.shape[0]

    d_pad = _round_up(max(q_in, k_in, hidden_dim, emb_dim), LANE)
    # Rows padded to a lane multiple so the k side of sim is lane-dense; the
    # padded rows are garbage we discard with an XLA slice.
    n_pad = _round_up(max(Nq, Nk), LANE)

    # bf16 weight slabs by default (f32 activations / accumulation everywhere).
    q_w, q_v = _pack_tower_params(q_params, d_pad, weight_dtype)
    k_w, k_v = _pack_tower_params(k_params, d_pad, weight_dtype)
    w_stack = jnp.stack([q_w, k_w])                        # (2, 3, Dp, Dp)
    v_stack = jnp.stack([q_v, k_v])                        # (2, 16, Dp) f32

    x_stack = jnp.zeros((2, n_pad, d_pad), jnp.float32)
    x_stack = x_stack.at[0, :Nq, :q_in].set(query.astype(jnp.float32))
    x_stack = x_stack.at[1, :Nk, :k_in].set(key.astype(jnp.float32))

    # ---- Phase 1: both towers; grid (tower, row_tile), both "parallel" ----
    tile_rows = _pick_tile(n_pad, (512, 256, 128))
    w_bytes = jnp.dtype(weight_dtype).itemsize
    tower_vmem = _vmem_limit(
        2 * 3 * d_pad * d_pad * w_bytes        # double-buffered weight slab
        + 2 * 16 * d_pad * 4                   # vector slab
        + 2 * 2 * tile_rows * d_pad * 4)       # x + emb tiles, double-buffered

    tower = functools.partial(tower_kernel, (hidden_dim, hidden_dim, emb_dim))
    emb_stack = pl.pallas_call(
        tower,
        out_shape=jax.ShapeDtypeStruct((2, n_pad, d_pad), jnp.float32),
        grid=(2, n_pad // tile_rows),
        in_specs=[
            pl.BlockSpec((None, tile_rows, d_pad), lambda t, i: (t, i, 0)),
            pl.BlockSpec((None, 3, d_pad, d_pad), lambda t, i: (t, 0, 0, 0)),
            pl.BlockSpec((None, 16, d_pad), lambda t, i: (t, 0, 0)),
        ],
        out_specs=pl.BlockSpec((None, tile_rows, d_pad), lambda t, i: (t, i, 0)),
        compiler_params=pltpu.CompilerParams(
            dimension_semantics=("parallel", "parallel"),
            vmem_limit_bytes=tower_vmem),
    )(x_stack, w_stack, v_stack)

    # ---- Phase 2: sim, tiled over (q rows, k rows), both "parallel" ----
    tm = _pick_tile(n_pad, (512, 256, 128))
    tn = _pick_tile(n_pad, (512, 256, 128))
    nq_rows = _round_up(Nq, tm)     # <= n_pad since tm | n_pad
    nk_cols = _round_up(Nk, tn)     # <= n_pad since tn | n_pad
    sim_vmem = _vmem_limit(2 * 4 * (tm * d_pad + tn * d_pad + tm * tn))

    inv_t = jnp.full((1,), 1.0 / float(temperature), jnp.float32)
    sim_pad = pl.pallas_call(
        sim_kernel,
        out_shape=jax.ShapeDtypeStruct((nq_rows, nk_cols), jnp.float32),
        grid=(nq_rows // tm, nk_cols // tn),
        in_specs=[
            pl.BlockSpec((None, tm, d_pad), lambda i, j: (0, i, 0)),  # q_emb
            pl.BlockSpec((None, tn, d_pad), lambda i, j: (1, j, 0)),  # k_emb
            pl.BlockSpec(memory_space=pltpu.MemorySpace.SMEM),        # 1/T
        ],
        out_specs=pl.BlockSpec((tm, tn), lambda i, j: (i, j)),
        compiler_params=pltpu.CompilerParams(
            dimension_semantics=("parallel", "parallel"),
            vmem_limit_bytes=sim_vmem),
    )(emb_stack, emb_stack, inv_t)

    # XLA-side slices (padded embedding columns are exactly 0; padded rows are
    # garbage and discarded here) — keeps all kernel stores lane-dense.
    sim = sim_pad[:Nq, :Nk]
    q_emb = emb_stack[0, :Nq, :emb_dim]
    k_emb = emb_stack[1, :Nk, :emb_dim]
    return sim, q_emb, k_emb


# ----------------------- pure-JAX reference & init -----------------------

def _tower_reference(x, params, w_dtype):
    """Unpadded reference mirroring the PyTorch formulation."""
    (W1, b1, g1, B1, W2, b2, g2, B2, Wo, bo, go, Bo) = params

    def lin_ln(h, W, b, g, beta, relu):
        h = jnp.dot(h.astype(w_dtype), W.astype(w_dtype),
                    preferred_element_type=jnp.float32) + b
        mu = jnp.mean(h, axis=-1, keepdims=True)
        var = jnp.mean(jnp.square(h - mu), axis=-1, keepdims=True)
        h = (h - mu) / jnp.sqrt(var + LN_EPS) * g + beta
        return jnp.maximum(h, 0.0) if relu else h

    h = lin_ln(x, W1, b1, g1, B1, True)
    h = lin_ln(h, W2, b2, g2, B2, True)
    h = lin_ln(h, Wo, bo, go, Bo, False)
    n = jnp.sqrt(jnp.sum(h * h, axis=-1, keepdims=True))
    return h / jnp.maximum(n, L2_EPS)


def init_tower_params(rng, in_dim, hidden_dim, out_dim):
    """Deterministic init matching TowerBlock(num_layers=3) shapes."""
    ks = jax.random.split(rng, 3)

    def linear(k, din, dout):
        kw, kb = jax.random.split(k)
        bound = 1.0 / np.sqrt(din)
        W = jax.random.uniform(kw, (din, dout), jnp.float32, -bound, bound)
        b = jax.random.uniform(kb, (1, dout), jnp.float32, -bound, bound)
        return W, b

    W1, b1 = linear(ks[0], in_dim, hidden_dim)
    g1, B1 = jnp.ones((1, hidden_dim), jnp.float32), jnp.zeros((1, hidden_dim), jnp.float32)
    W2, b2 = linear(ks[1], hidden_dim, hidden_dim)
    g2, B2 = jnp.ones((1, hidden_dim), jnp.float32), jnp.zeros((1, hidden_dim), jnp.float32)
    Wo, bo = linear(ks[2], hidden_dim, out_dim)
    go, Bo = jnp.ones((1, out_dim), jnp.float32), jnp.zeros((1, out_dim), jnp.float32)
    return (W1, b1, g1, B1, W2, b2, g2, B2, Wo, bo, go, Bo)


if __name__ == "__main__":
    # Small shapes consistent with the module's forward(); hidden is already a
    # multiple of 128, query/key/embedding dims exercise the padding path.
    Nq, Nk = 16, 16
    query_dim, key_dim = 48, 64
    hidden_dim, embedding_dim = 128, 64
    temperature = 0.1

    root = jax.random.PRNGKey(0)
    kq, kk, kqt, kkt = jax.random.split(root, 4)
    query = jax.random.normal(kq, (Nq, query_dim), jnp.float32)
    key = jax.random.normal(kk, (Nk, key_dim), jnp.float32)
    q_params = init_tower_params(kqt, query_dim, hidden_dim, embedding_dim)
    k_params = init_tower_params(kkt, key_dim, hidden_dim, embedding_dim)

    # f32-weight run: tight check against the pure-JAX reference.
    sim32, qe32, ke32 = semantic_retriever_forward(
        query, key, q_params, k_params, temperature, weight_dtype=jnp.float32)
    jax.block_until_ready((sim32, qe32, ke32))
    q_ref32 = _tower_reference(query, q_params, jnp.float32)
    k_ref32 = _tower_reference(key, k_params, jnp.float32)
    sim_ref32 = jnp.dot(q_ref32, k_ref32.T) / temperature
    assert np.allclose(np.asarray(qe32), np.asarray(q_ref32), rtol=1e-3, atol=1e-3)
    assert np.allclose(np.asarray(ke32), np.asarray(k_ref32), rtol=1e-3, atol=1e-3)
    assert np.allclose(np.asarray(sim32), np.asarray(sim_ref32), rtol=1e-3, atol=5e-3)

    # Default run (bf16 weight slabs): check against a bf16-weight reference.
    sim16, qe16, ke16 = semantic_retriever_forward(
        query, key, q_params, k_params, temperature)
    jax.block_until_ready((sim16, qe16, ke16))
    q_ref16 = _tower_reference(query, q_params, jnp.bfloat16)
    k_ref16 = _tower_reference(key, k_params, jnp.bfloat16)
    sim_ref16 = jnp.dot(q_ref16, k_ref16.T) / temperature
    assert np.allclose(np.asarray(qe16), np.asarray(q_ref16), rtol=1e-2, atol=1e-2)
    assert np.allclose(np.asarray(ke16), np.asarray(k_ref16), rtol=1e-2, atol=1e-2)
    assert np.allclose(np.asarray(sim16), np.asarray(sim_ref16), rtol=1e-2, atol=5e-2)

    print("KERNEL_OK")
</pallas_src>

<mosaic_0001>
module attributes {stable_mosaic.version = 11 : i64} {
  func.func @tower_kernel(%arg0: i32, %arg1: i32, %arg2: memref<1x128x128xf32, #tpu.memory_space<vmem>>, %arg3: memref<1x3x128x128xf32, #tpu.memory_space<vmem>>, %arg4: memref<1x16x128xf32, #tpu.memory_space<vmem>>, %arg5: memref<1x128x128xf32, #tpu.memory_space<vmem>>) attributes {dimension_semantics = [#tpu.dimension_semantics<parallel>, #tpu.dimension_semantics<parallel>], iteration_bounds = array<i64: 2, 1>, scalar_prefetch = 0 : i64, scratch_operands = 0 : i64, tpu.core_type = #tpu.core_type<tc>, window_params = [{transform_indices = @transform_0, window_bounds = array<i64: 1, 128, 128>}, {transform_indices = @transform_1, window_bounds = array<i64: 1, 3, 128, 128>}, {transform_indices = @transform_2, window_bounds = array<i64: 1, 16, 128>}, {transform_indices = @transform_3, window_bounds = array<i64: 1, 128, 128>}]} {
    %c0 = arith.constant 0 : index
    %c0_0 = arith.constant 0 : index
    %c0_1 = arith.constant 0 : index
    %0 = vector.load %arg2[%c0, %c0_0, %c0_1] : memref<1x128x128xf32, #tpu.memory_space<vmem>>, vector<1x128x128xf32>
    %1 = vector.shape_cast %0 : vector<1x128x128xf32> to vector<128x128xf32>
    %c0_2 = arith.constant 0 : index
    %c0_3 = arith.constant 0 : index
    %c0_4 = arith.constant 0 : index
    %c0_5 = arith.constant 0 : index
    %2 = vector.load %arg3[%c0_2, %c0_3, %c0_4, %c0_5] : memref<1x3x128x128xf32, #tpu.memory_space<vmem>>, vector<1x1x128x128xf32>
    %3 = vector.shape_cast %2 : vector<1x1x128x128xf32> to vector<128x128xf32>
    %c0_6 = arith.constant 0 : index
    %c0_7 = arith.constant 0 : index
    %c0_8 = arith.constant 0 : index
    %4 = vector.load %arg4[%c0_6, %c0_7, %c0_8] : memref<1x16x128xf32, #tpu.memory_space<vmem>>, vector<1x1x128xf32>
    %5 = vector.shape_cast %4 : vector<1x1x128xf32> to vector<1x128xf32>
    %c0_9 = arith.constant 0 : index
    %c1 = arith.constant 1 : index
    %c0_10 = arith.constant 0 : index
    %6 = vector.load %arg4[%c0_9, %c1, %c0_10] : memref<1x16x128xf32, #tpu.memory_space<vmem>>, vector<1x1x128xf32>
    %7 = vector.shape_cast %6 : vector<1x1x128xf32> to vector<1x128xf32>
    %c0_11 = arith.constant 0 : index
    %c2 = arith.constant 2 : index
    %c0_12 = arith.constant 0 : index
    %8 = vector.load %arg4[%c0_11, %c2, %c0_12] : memref<1x16x128xf32, #tpu.memory_space<vmem>>, vector<1x1x128xf32>
    %9 = vector.shape_cast %8 : vector<1x1x128xf32> to vector<1x128xf32>
    %cst = arith.constant dense<0.000000e+00> : vector<128x128xf32>
    %10 = tpu.matmul %1, %3, %cst {dimension_numbers = #tpu.dot_dimension_numbers<[1], [0], [0], [1], [0, 0, 1, 1], [], []>} : vector<128x128xf32>, vector<128x128xf32>, vector<128x128xf32> -> vector<128x128xf32>
    %11 = vector.broadcast %5 : vector<1x128xf32> to vector<128x128xf32>
    %12 = arith.addf %10, %11 : vector<128x128xf32>
    %cst_13 = arith.constant dense<0.000000e+00> : vector<128xf32>
    %13 = vector.multi_reduction <add>, %12, %cst_13 [1] : vector<128x128xf32> to vector<128xf32>
    %14 = vector.shape_cast %13 : vector<128xf32> to vector<128x1xf32>
    %15 = arith.mulf %12, %12 : vector<128x128xf32>
    %cst_14 = arith.constant dense<0.000000e+00> : vector<128xf32>
    %16 = vector.multi_reduction <add>, %15, %cst_14 [1] : vector<128x128xf32> to vector<128xf32>
    %17 = vector.shape_cast %16 : vector<128xf32> to vector<128x1xf32>
    %cst_15 = arith.constant 7.812500e-03 : f32
    %18 = vector.broadcast %cst_15 : f32 to vector<128x1xf32>
    %19 = arith.mulf %14, %18 : vector<128x1xf32>
    %cst_16 = arith.constant 7.812500e-03 : f32
    %20 = vector.broadcast %cst_16 : f32 to vector<128x1xf32>
    %21 = arith.mulf %17, %20 : vector<128x1xf32>
    %22 = arith.mulf %19, %19 : vector<128x1xf32>
    %23 = arith.subf %21, %22 : vector<128x1xf32>
    %24 = vector.broadcast %19 : vector<128x1xf32> to vector<128x128xf32>
    %25 = arith.subf %12, %24 : vector<128x128xf32>
    %cst_17 = arith.constant 9.99999974E-6 : f32
    %26 = vector.broadcast %cst_17 : f32 to vector<128x1xf32>
    %27 = arith.addf %23, %26 : vector<128x1xf32>
    %28 = math.rsqrt %27 : vector<128x1xf32>
    %29 = vector.broadcast %28 : vector<128x1xf32> to vector<128x128xf32>
    %30 = arith.mulf %25, %29 : vector<128x128xf32>
    %31 = vector.broadcast %7 : vector<1x128xf32> to vector<128x128xf32>
    %32 = arith.mulf %30, %31 : vector<128x128xf32>
    %33 = vector.broadcast %9 : vector<1x128xf32> to vector<128x128xf32>
    %34 = arith.addf %32, %33 : vector<128x128xf32>
    %cst_18 = arith.constant 0.000000e+00 : f32
    %35 = vector.broadcast %cst_18 : f32 to vector<128x128xf32>
    %36 = arith.maximumf %34, %35 : vector<128x128xf32>
    %c0_19 = arith.constant 0 : index
    %c1_20 = arith.constant 1 : index
    %c0_21 = arith.constant 0 : index
    %c0_22 = arith.constant 0 : index
    %37 = vector.load %arg3[%c0_19, %c1_20, %c0_21, %c0_22] : memref<1x3x128x128xf32, #tpu.memory_space<vmem>>, vector<1x1x128x128xf32>
    %38 = vector.shape_cast %37 : vector<1x1x128x128xf32> to vector<128x128xf32>
    %c0_23 = arith.constant 0 : index
    %c3 = arith.constant 3 : index
    %c0_24 = arith.constant 0 : index
    %39 = vector.load %arg4[%c0_23, %c3, %c0_24] : memref<1x16x128xf32, #tpu.memory_space<vmem>>, vector<1x1x128xf32>
    %40 = vector.shape_cast %39 : vector<1x1x128xf32> to vector<1x128xf32>
    %c0_25 = arith.constant 0 : index
    %c4 = arith.constant 4 : index
    %c0_26 = arith.constant 0 : index
    %41 = vector.load %arg4[%c0_25, %c4, %c0_26] : memref<1x16x128xf32, #tpu.memory_space<vmem>>, vector<1x1x128xf32>
    %42 = vector.shape_cast %41 : vector<1x1x128xf32> to vector<1x128xf32>
    %c0_27 = arith.constant 0 : index
    %c5 = arith.constant 5 : index
    %c0_28 = arith.constant 0 : index
    %43 = vector.load %arg4[%c0_27, %c5, %c0_28] : memref<1x16x128xf32, #tpu.memory_space<vmem>>, vector<1x1x128xf32>
    %44 = vector.shape_cast %43 : vector<1x1x128xf32> to vector<1x128xf32>
    %cst_29 = arith.constant dense<0.000000e+00> : vector<128x128xf32>
    %45 = tpu.matmul %36, %38, %cst_29 {dimension_numbers = #tpu.dot_dimension_numbers<[1], [0], [0], [1], [0, 0, 1, 1], [], []>} : vector<128x128xf32>, vector<128x128xf32>, vector<128x128xf32> -> vector<128x128xf32>
    %46 = vector.broadcast %40 : vector<1x128xf32> to vector<128x128xf32>
    %47 = arith.addf %45, %46 : vector<128x128xf32>
    %cst_30 = arith.constant dense<0.000000e+00> : vector<128xf32>
    %48 = vector.multi_reduction <add>, %47, %cst_30 [1] : vector<128x128xf32> to vector<128xf32>
    %49 = vector.shape_cast %48 : vector<128xf32> to vector<128x1xf32>
    %50 = arith.mulf %47, %47 : vector<128x128xf32>
    %cst_31 = arith.constant dense<0.000000e+00> : vector<128xf32>
    %51 = vector.multi_reduction <add>, %50, %cst_31 [1] : vector<128x128xf32> to vector<128xf32>
    %52 = vector.shape_cast %51 : vector<128xf32> to vector<128x1xf32>
    %cst_32 = arith.constant 7.812500e-03 : f32
    %53 = vector.broadcast %cst_32 : f32 to vector<128x1xf32>
    %54 = arith.mulf %49, %53 : vector<128x1xf32>
    %cst_33 = arith.constant 7.812500e-03 : f32
    %55 = vector.broadcast %cst_33 : f32 to vector<128x1xf32>
    %56 = arith.mulf %52, %55 : vector<128x1xf32>
    %57 = arith.mulf %54, %54 : vector<128x1xf32>
    %58 = arith.subf %56, %57 : vector<128x1xf32>
    %59 = vector.broadcast %54 : vector<128x1xf32> to vector<128x128xf32>
    %60 = arith.subf %47, %59 : vector<128x128xf32>
    %cst_34 = arith.constant 9.99999974E-6 : f32
    %61 = vector.broadcast %cst_34 : f32 to vector<128x1xf32>
    %62 = arith.addf %58, %61 : vector<128x1xf32>
    %63 = math.rsqrt %62 : vector<128x1xf32>
    %64 = vector.broadcast %63 : vector<128x1xf32> to vector<128x128xf32>
    %65 = arith.mulf %60, %64 : vector<128x128xf32>
    %66 = vector.broadcast %42 : vector<1x128xf32> to vector<128x128xf32>
    %67 = arith.mulf %65, %66 : vector<128x128xf32>
    %68 = vector.broadcast %44 : vector<1x128xf32> to vector<128x128xf32>
    %69 = arith.addf %67, %68 : vector<128x128xf32>
    %cst_35 = arith.constant 0.000000e+00 : f32
    %70 = vector.broadcast %cst_35 : f32 to vector<128x128xf32>
    %71 = arith.maximumf %69, %70 : vector<128x128xf32>
    %c0_36 = arith.constant 0 : index
    %c2_37 = arith.constant 2 : index
    %c0_38 = arith.constant 0 : index
    %c0_39 = arith.constant 0 : index
    %72 = vector.load %arg3[%c0_36, %c2_37, %c0_38, %c0_39] : memref<1x3x128x128xf32, #tpu.memory_space<vmem>>, vector<1x1x128x128xf32>
    %73 = vector.shape_cast %72 : vector<1x1x128x128xf32> to vector<128x128xf32>
    %c0_40 = arith.constant 0 : index
    %c6 = arith.constant 6 : index
    %c0_41 = arith.constant 0 : index
    %74 = vector.load %arg4[%c0_40, %c6, %c0_41] : memref<1x16x128xf32, #tpu.memory_space<vmem>>, vector<1x1x128xf32>
    %75 = vector.shape_cast %74 : vector<1x1x128xf32> to vector<1x128xf32>
    %c0_42 = arith.constant 0 : index
    %c7 = arith.constant 7 : index
    %c0_43 = arith.constant 0 : index
    %76 = vector.load %arg4[%c0_42, %c7, %c0_43] : memref<1x16x128xf32, #tpu.memory_space<vmem>>, vector<1x1x128xf32>
    %77 = vector.shape_cast %76 : vector<1x1x128xf32> to vector<1x128xf32>
    %c0_44 = arith.constant 0 : index
    %c8 = arith.constant 8 : index
    %c0_45 = arith.constant 0 : index
    %78 = vector.load %arg4[%c0_44, %c8, %c0_45] : memref<1x16x128xf32, #tpu.memory_space<vmem>>, vector<1x1x128xf32>
    %79 = vector.shape_cast %78 : vector<1x1x128xf32> to vector<1x128xf32>
    %cst_46 = arith.constant dense<0.000000e+00> : vector<128x128xf32>
    %80 = tpu.matmul %71, %73, %cst_46 {dimension_numbers = #tpu.dot_dimension_numbers<[1], [0], [0], [1], [0, 0, 1, 1], [], []>} : vector<128x128xf32>, vector<128x128xf32>, vector<128x128xf32> -> vector<128x128xf32>
    %81 = vector.broadcast %75 : vector<1x128xf32> to vector<128x128xf32>
    %82 = arith.addf %80, %81 : vector<128x128xf32>
    %cst_47 = arith.constant dense<0.000000e+00> : vector<128xf32>
    %83 = vector.multi_reduction <add>, %82, %cst_47 [1] : vector<128x128xf32> to vector<128xf32>
    %84 = vector.shape_cast %83 : vector<128xf32> to vector<128x1xf32>
    %85 = arith.mulf %82, %82 : vector<128x128xf32>
    %cst_48 = arith.constant dense<0.000000e+00> : vector<128xf32>
    %86 = vector.multi_reduction <add>, %85, %cst_48 [1] : vector<128x128xf32> to vector<128xf32>
    %87 = vector.shape_cast %86 : vector<128xf32> to vector<128x1xf32>
    %cst_49 = arith.constant 1.562500e-02 : f32
    %88 = vector.broadcast %cst_49 : f32 to vector<128x1xf32>
    %89 = arith.mulf %84, %88 : vector<128x1xf32>
    %cst_50 = arith.constant 1.562500e-02 : f32
    %90 = vector.broadcast %cst_50 : f32 to vector<128x1xf32>
    %91 = arith.mulf %87, %90 : vector<128x1xf32>
    %92 = arith.mulf %89, %89 : vector<128x1xf32>
    %93 = arith.subf %91, %92 : vector<128x1xf32>
    %94 = vector.broadcast %89 : vector<128x1xf32> to vector<128x128xf32>
    %95 = arith.subf %82, %94 : vector<128x128xf32>
    %cst_51 = arith.constant 9.99999974E-6 : f32
    %96 = vector.broadcast %cst_51 : f32 to vector<128x1xf32>
    %97 = arith.addf %93, %96 : vector<128x1xf32>
    %98 = math.rsqrt %97 : vector<128x1xf32>
    %99 = vector.broadcast %98 : vector<128x1xf32> to vector<128x128xf32>
    %100 = arith.mulf %95, %99 : vector<128x128xf32>
    %101 = vector.broadcast %77 : vector<1x128xf32> to vector<128x128xf32>
    %102 = arith.mulf %100, %101 : vector<128x128xf32>
    %103 = vector.broadcast %79 : vector<1x128xf32> to vector<128x128xf32>
    %104 = arith.addf %102, %103 : vector<128x128xf32>
    %105 = arith.mulf %104, %104 : vector<128x128xf32>
    %cst_52 = arith.constant dense<0.000000e+00> : vector<128xf32>
    %106 = vector.multi_reduction <add>, %105, %cst_52 [1] : vector<128x128xf32> to vector<128xf32>
    %107 = vector.shape_cast %106 : vector<128xf32> to vector<128x1xf32>
    %cst_53 = arith.constant 1.000000e-24 : f32
    %108 = vector.broadcast %cst_53 : f32 to vector<128x1xf32>
    %109 = arith.maximumf %107, %108 : vector<128x1xf32>
    %110 = math.rsqrt %109 : vector<128x1xf32>
    %111 = vector.broadcast %110 : vector<128x1xf32> to vector<128x128xf32>
    %112 = arith.mulf %104, %111 : vector<128x128xf32>
    %c0_54 = arith.constant 0 : index
    %c0_55 = arith.constant 0 : index
    %c0_56 = arith.constant 0 : index
    %113 = vector.load %arg5[%c0_54, %c0_55, %c0_56] : memref<1x128x128xf32, #tpu.memory_space<vmem>>, vector<1x128x128xf32>
    %114 = vector.shape_cast %113 : vector<1x128x128xf32> to vector<128x128xf32>
    %115 = vector.shape_cast %112 : vector<128x128xf32> to vector<1x128x128xf32>
    tpu.vector_store %arg5[%c0_54, %c0_55, %c0_56], %115 {strides = array<i32>} : memref<1x128x128xf32, #tpu.memory_space<vmem>>, vector<1x128x128xf32>,
    return
  }
  func.func @transform_0(%arg0: i32, %arg1: i32) -> (i32, i32, i32) {
    %c0_i32 = arith.constant 0 : i32
    %c0_i32_0 = arith.constant 0 : i32
    return %arg0, %arg1, %c0_i32 : i32, i32, i32
  }
  func.func @transform_1(%arg0: i32, %arg1: i32) -> (i32, i32, i32, i32) {
    %c0_i32 = arith.constant 0 : i32
    %c0_i32_0 = arith.constant 0 : i32
    %c0_i32_1 = arith.constant 0 : i32
    %c0_i32_2 = arith.constant 0 : i32
    return %arg0, %c0_i32, %c0_i32_0, %c0_i32_1 : i32, i32, i32, i32
  }
  func.func @transform_2(%arg0: i32, %arg1: i32) -> (i32, i32, i32) {
    %c0_i32 = arith.constant 0 : i32
    %c0_i32_0 = arith.constant 0 : i32
    %c0_i32_1 = arith.constant 0 : i32
    return %arg0, %c0_i32, %c0_i32_0 : i32, i32, i32
  }
  func.func @transform_3(%arg0: i32, %arg1: i32) -> (i32, i32, i32) {
    %c0_i32 = arith.constant 0 : i32
    %c0_i32_0 = arith.constant 0 : i32
    return %arg0, %arg1, %c0_i32 : i32, i32, i32
  }
}

</mosaic_0001>

<bundles_post_ra>
// kernel: tpu_custom_call.1
= control target key start
LH: loop header
LB: loop body
LE: loop exit
PB: predicated region body
PF: predicated region fallthrough
CT: control target
= control target key end

     0   :  { %s3733_s0 = inlined_call_operand.hbm [shape: f32[2,128,128], index: 0, kind: input, shape index: {}]   ;;  %s3734_s1 = inlined_call_operand.hbm [shape: f32[2,3,128,128], index: 1, kind: input, shape index: {}]   ;;  %s3735_s2 = inlined_call_operand.hbm [shape: f32[2,16,128], index: 2, kind: input, shape index: {}]   ;;  %s3736_s3 = inlined_call_operand.hbm [shape: f32[2,128,128], index: 3, kind: output, shape index: {}]  }
   0x1   :  { %3744 = sst [smem:[#allocation13_spill]] %s3733_s0 }
   0x2   :  { %3745 = sst [smem:[#allocation14_spill]] %s3734_s1 }
   0x3   :  { %8 = vsyncpa [#allocation3], 0 }
   0x4   :  { %10 = vsyncpa [#allocation3 + $0x1], 0 }
   0x5   :  { %11 = vsyncpa [#allocation6], 0 }
   0x6   :  { %13 = vsyncpa [#allocation6 + $0x1], 0 }
   0x7   :  { %14 = vsyncpa [#allocation4], 0 }
   0x8   :  { %16 = vsyncpa [#allocation4 + $0x1], 0  ;;  %s2695_s12 = smov 0   ;;  %s2697_s13 = smov 0  }
   0x9   :  { %s2699_s14 = smov 0   ;;  %s2701_s15 = smov 0  }
   0xa   :  { %s2703_s16 = smov 0   ;;  %s2705_s17 = smov 0  }
   0xb LB: > { %s2726_s18 = sadd.s32 4294967295, %s2665_s17   ;;  %s1843_s19 = sadd.s32 4294967294, %s2665_s17   ;;  %s2665_s17 = sphi %s2705_s17, %s22_s17   ;;  %s2661_s16 = sphi %s2703_s16, %s3770_s16   ;;  %s2657_s15 = sphi %s2701_s15, %s3769_s15   ;;  %s2653_s14 = sphi %s2699_s14, %s3768_s14   ;;  %s2649_s13 = sphi %s2697_s13, %s3767_s13   ;;  %s2645_s12 = sphi %s2695_s12, %s3766_s12  }
   0xc   : > { %s34_s20 = sadd.s32 1, %s2661_s16  ;;  %s43_s21 = sadd.s32 1, %s2653_s14 }
   0xd   : > { %p36_p0 = scmp.ge.s32.totalorder %s34_s20, 2  ;;  %p50_p1 = scmp.ne.s32.totalorder %s2653_s14, %s2649_s13 }
   0xe   : > { %p51_p2 = scmp.eq.s32.totalorder %s2665_s17, 0  ;;  %p56_p3 = scmp.ne.s32.totalorder %s2649_s13, %s2645_s12 }
   0xf   : > { %s3772_s20 = smov (%p36_p0, %s34_s20), 0  ;;  %p57_p5 = scmp.eq.s32.totalorder %s2726_s18, 0 }
  0x10   : > { %3746 = sst [smem:[#allocation12_spill]] %s3772_s20  ;;  %p2738_p4 = por %p51_p2, %p50_p1 }
  0x11   : > { %s38_s23 = ssub.s32 %s2661_s16, %s3772_s20  ;;  %p134_p6 = scmp.eq.s32.totalorder %s2726_s18, 1 }
  0x12   : > { %p41_p7 = scmp.eq.s32.totalorder %s38_s23, 0  ;;  %p2746_p8 = por %p57_p5, %p56_p3 }
  0x13   : > { %p2750_p9 = por %p134_p6, %p50_p1  ;;  %p140_p10 = scmp.eq.s32.totalorder %s1843_s19, 1 }
  0x14   : > { %s3748_s24 = scalar_select %p2746_p8, 1, 0 }
  0x15   : > { %s3749_s25 = scalar_select %p2750_p9, 1, 0 }
  0x16   : > { %s2755_s26 = scalar_select %p41_p7, %s2653_s14, %s43_s21  }
  0x17   : > { %p2757_p11 = por %p140_p10, %p56_p3  ;;  %p2307_p13 = scmp.lt.s32.totalorder %s2665_s17, 2 }
  0x18   : > { %s2764_s28 = sand.u32 1, %s2653_s14   ;;  %s183_s30 = sand.u32 1, %s2665_s17  }
  0x19   : > { %s3750_s27 = scalar_select %p2757_p11, 1, 0 }
  0x1a   : > { %p2768_p0 = pnand %p2307_p13, %p2738_p4  ;;  %s2282_s4 = smul.u32 384, %s2764_s28 }
  0x1b   : > { %s2283_s5 = smul.u32 6144, %s2661_s16  ;;  %s3752_s1 = sld [smem:[#allocation14_spill]] }
  0x1c   : > { %s187_s9 = scalar_lea.vmem [#allocation5], %s2282_s4  ;;  %s2784_s11 = scalar_lea.sflag [#allocation6], %s183_s30 }
  0x1d   : > { %s194_s10 = sshll.u32 %s187_s9, 4  ;;  %p2790_p4 = pneg %p2768_p0  ;;  %s2781_s10 = int_to_ptr.vmem [resolvable:$true] %s194_s10 }
  0x21   : > { %s2779_s8 = scalar_lea.hbm %s3752_s1, %s2283_s5  ;;  %s2494_s4 = scalar_lea.hbm %s3752_s1, 12288 }
  0x22   : > { %s2489_s19 = scalar_lea.hbm %s2779_s8, 6144  ;;  %p2495_p7 = scmp.lt.u32.totalorder %s2779_s8, %s3752_s1 }
  0x23   : > { %p2490_p3 = scmp.ne.s32.totalorder %s2779_s8, %s2489_s19  ;;  %p2496_p10 = scmp.lt.u32.totalorder %s2494_s4, %s2489_s19 }
  0x24   : > { %p2498_p12 = scmp.lt.u32.totalorder %s2489_s19, %s2779_s8 }
  0x25   : > { %p2492_p5 = pnand %p2790_p4, %p2490_p3  ;;  %p2497_p13 = por %p2496_p10, %p2495_p7 }
  0x27   : > { %p2493_p6 = pneg %p2492_p5  ;;  %p2499_p1 = por %p2498_p12, %p2497_p13 }
  0x29   : > { %p2500_p2 = pnand %p2499_p1, %p2493_p6 }
  0x2b   : > { %2503 = shalt.err (!%p2500_p2)
}
  0x2c   : > { %s2504_s30 = scalar_lea.vmem %s2781_s10, 6144  ;;  %s2667_s7 = smov [#allocation5]  }
  0x2d   : > { %p2505_p3 = scmp.ne.s32.totalorder %s2781_s10, %s2504_s30  ;;  %s2509_s9 = sshll.u32 %s2667_s7, 4  ;;  %s2510_s9 = int_to_ptr.vmem [resolvable:$false] %s2509_s9 }
  0x2e   : > { %s2511_s22 = scalar_lea.vmem %s2510_s9, 12288  ;;  %p2512_p9 = scmp.lt.s32.totalorder %s2781_s10, %s2510_s9 }
  0x2f   : > { %p2507_p5 = pnand %p2505_p3, %p2790_p4  ;;  %p2513_p8 = scmp.lt.s32.totalorder %s2511_s22, %s2504_s30 }
  0x31   : > { %p2508_p11 = pneg %p2507_p5  ;;  %p2514_p7 = por %p2513_p8, %p2512_p9 }
  0x33   : > { %p2515_p10 = pnand %p2514_p7, %p2508_p11 }
  0x35   : > { %2518 = shalt.err (!%p2515_p10)
}
  0x36   : > { %s3739_s19 = smov 128   ;;  %s3741_s23 = smov 8  }
  0x37   : > { %2299 = dma.hbm_to_vmem [thread:$0]  (!%p2768_p0), %s2779_s8, 6144, %s2781_s10, %s2784_s11, %s3739_s19, %s3739_s19, %s3741_s23  }
  0x38   : > { %p3754_p8 = scmp.lt.s32.totalorder %s2665_s17, 3  ;;  %p3755_p9 = scmp.ge.s32.totalorder %s2665_s17, 1 }
  0x39   : > { %s1846_s5 = sshll.u32 %s2764_s28, 7  ;;  %s1903_s6 = sshll.u32 %s2661_s16, 11 }
  0x3a   : > { %p2821_p11 = pnand %p3755_p9, %p3754_p8  ;;  %s3757_s0 = sld [smem:[#allocation13_spill]] }
  0x3b   : > { %s164_s22 = scalar_lea.vmem [#allocation2], %s1846_s5  ;;  %s1850_s8 = sshll.u32 %s2764_s28, 4 }
  0x3c   : > { %s3756_s4 = scalar_select %p2821_p11, 1, 0 }
  0x3d   : > { %s173_s1 = sshll.u32 %s164_s22, 4  ;;  %s161_s10 = scalar_lea.sflag [#allocation3], %s2764_s28  ;;  %s2833_s1 = int_to_ptr.vmem [resolvable:$true] %s173_s1 }
  0x40   : > { %s2830_s9 = scalar_lea.hbm %s3757_s0, %s1903_s6  ;;  %s2524_s6 = scalar_lea.hbm %s3757_s0, 4096 }
  0x41   : > { %s2519_s19 = scalar_lea.hbm %s2830_s9, 2048  ;;  %p2525_p6 = scmp.lt.u32.totalorder %s2830_s9, %s3757_s0 }
  0x42   : > { %p2520_p12 = scmp.ne.s32.totalorder %s2830_s9, %s2519_s19  ;;  %p2526_p13 = scmp.lt.u32.totalorder %s2524_s6, %s2519_s19 }
  0x43   : > { %p2528_p5 = scmp.lt.u32.totalorder %s2519_s19, %s2830_s9 }
  0x44   : > { %p2522_p1 = pnand %p2520_p12, %p2790_p4  ;;  %p2527_p3 = por %p2526_p13, %p2525_p6 }
  0x46   : > { %p2523_p2 = pneg %p2522_p1  ;;  %p2529_p7 = por %p2528_p5, %p2527_p3 }
  0x48   : > { %p2530_p10 = pnand %p2529_p7, %p2523_p2 }
  0x4a   : > { %2533 = shalt.err (!%p2530_p10)
}
  0x4b   : > { %s2534_s5 = scalar_lea.vmem %s2833_s1, 2048  ;;  %s2670_s20 = smov [#allocation2]  }
  0x4c   : > { %p2535_p8 = scmp.ne.s32.totalorder %s2833_s1, %s2534_s5  ;;  %s2539_s23 = sshll.u32 %s2670_s20, 4  ;;  %s2540_s23 = int_to_ptr.vmem [resolvable:$false] %s2539_s23 }
  0x4d   : > { %s2541_s22 = scalar_lea.vmem %s2540_s23, 4096  ;;  %p2542_p1 = scmp.lt.s32.totalorder %s2833_s1, %s2540_s23 }
  0x4e   : > { %p2537_p9 = pnand %p2535_p8, %p2790_p4  ;;  %p2543_p11 = scmp.lt.s32.totalorder %s2541_s22, %s2534_s5 }
  0x50   : > { %p2538_p12 = pneg %p2537_p9  ;;  %p2544_p6 = por %p2543_p11, %p2542_p1 }
  0x52   : > { %p2545_p13 = pnand %p2544_p6, %p2538_p12 }
  0x54   : > { %2548 = shalt.err (!%p2545_p13)
}
  0x55   : > { %s3758_s19 = smov 8   ;;  %s3759_s6 = smov 128  }
  0x56   : > { %2296 = dma.hbm_to_vmem [thread:$0]  (!%p2768_p0), %s2830_s9, 2048, %s2833_s1, %s161_s10, %s3759_s6, %s3759_s6, %s3758_s19  }
  0x57   : > { %s1904_s30 = sshll.u32 %s2661_s16, 8  ;;  %s208_s7 = scalar_lea.vmem [#allocation7], %s1850_s8 }
  0x58   : > { %s215_s5 = sshll.u32 %s208_s7, 4  ;;  %s2868_s22 = scalar_lea.hbm %s3735_s2, %s1904_s30  ;;  %s2870_s5 = int_to_ptr.vmem [resolvable:$true] %s215_s5 }
  0x59   : > { %s2549_s0 = scalar_lea.hbm %s2868_s22, 256  ;;  %s2554_s9 = scalar_lea.hbm %s3735_s2, 512 }
  0x5a   : > { %p2550_p11 = scmp.ne.s32.totalorder %s2868_s22, %s2549_s0  ;;  %p2555_p5 = scmp.lt.u32.totalorder %s2868_s22, %s3735_s2 }
  0x5b   : > { %p2556_p7 = scmp.lt.u32.totalorder %s2554_s9, %s2549_s0  ;;  %p2558_p8 = scmp.lt.u32.totalorder %s2549_s0, %s2868_s22 }
  0x5c   : > { %p2552_p2 = pnand %p2550_p11, %p2790_p4 }
  0x5d   : > { %p2557_p10 = por %p2556_p7, %p2555_p5 }
  0x5e   : > { %p2553_p3 = pneg %p2552_p2 }
  0x5f   : > { %p2559_p9 = por %p2558_p8, %p2557_p10 }
  0x61   : > { %p2560_p12 = pnand %p2559_p9, %p2553_p3 }
  0x63   : > { %2563 = shalt.err (!%p2560_p12)
}
  0x64   : > { %s2564_s30 = scalar_lea.vmem %s2870_s5, 256  ;;  %s2671_s7 = smov [#allocation7]  }
  0x65   : > { %p2565_p1 = scmp.ne.s32.totalorder %s2870_s5, %s2564_s30  ;;  %s2569_s20 = sshll.u32 %s2671_s7, 4  ;;  %s2570_s20 = int_to_ptr.vmem [resolvable:$false] %s2569_s20 }
  0x66   : > { %s2571_s23 = scalar_lea.vmem %s2570_s20, 512  ;;  %p2572_p11 = scmp.lt.s32.totalorder %s2870_s5, %s2570_s20 }
  0x67   : > { %p2567_p6 = pnand %p2565_p1, %p2790_p4  ;;  %p2573_p2 = scmp.lt.s32.totalorder %s2571_s23, %s2564_s30 }
  0x69   : > { %p2568_p13 = pneg %p2567_p6  ;;  %p2574_p5 = por %p2573_p2, %p2572_p11 }
  0x6b   : > { %p2575_p7 = pnand %p2574_p5, %p2568_p13 }
  0x6d   : > { %2578 = shalt.err (!%p2575_p7)
}
  0x6e   : > { %2302 = dma.hbm_to_vmem [thread:$0]  (!%p2768_p0), %s2868_s22, 256, %s2870_s5, %s2784_s11, %s3759_s6, %s3759_s6, %s3758_s19  }
  0x6f   : > { %p3760_p4 = scmp.ne.s32.totalorder %s3756_s4, 0 }
  0x70   : > { %s2900_s0 = sand.u32 (!%p3760_p4), 1, %s2649_s13   ;;  %p3761_p3 = scmp.ne.s32.totalorder (!%p3760_p4), %s3748_s24, 0 }
  0x71   : > { %227 = sbr.rel (%p3760_p4) target bundleno = 1579 (0x62b), region = 32  ;;  %s1854_s21 = sshll.u32 (!%p3760_p4), %s2900_s0, 7 }
  0x72   : > { %s230_s1 = scalar_lea.sflag (!%p3760_p4), [#allocation3], %s2900_s0  ;;  %s2906_s29 = scalar_lea.vmem (!%p3760_p4), [#allocation2], %s1854_s21 }
  0x78   : > { %2632 = dma.done.wait (%p3761_p3), %s230_s1, 2048  }
  0x79   : > { %2634 = vsyncadd (%p3761_p3), %s230_s1, 4294965248  ;;  %s238_s11 = sand.u32 1, %s2726_s18   ;;  %s2284_s4 = smul.u32 384, %s2900_s0 }
  0x7a   : > { %s239_s19 = scalar_lea.sflag [#allocation6], %s238_s11 }
  0x7b   : > { %s2914_s6 = scalar_lea.vmem [#allocation5], %s2284_s4 }
  0x7c   : > { %2636 = dma.done.wait (%p3761_p3), %s239_s19, 6400  }
  0x7d   : > { %2638 = vsyncadd (%p3761_p3), %s239_s19, 4294960896  ;;  %v302_v0 = vld [vmem:[%s2914_s6] sm:$0xff]  ;;  %v303_v1 = vld [vmem:[%s2914_s6 + $0x8] sm:$0xff]  ;;  %s1855_s18 = sshll.u32 %s2900_s0, 4  ;;  %s3645_s5 = scalar_lea.vmem [#allocation8], %s1854_s21 }
  0x7e   : > { %v304_v2 = vld [vmem:[%s2914_s6 + $0x10] sm:$0xff]  ;;  %v2170_v3 = vpack.c.bf16 %v303_v1, %v302_v0  ;;  %v305_v4 = vld [vmem:[%s2914_s6 + $0x18] sm:$0xff]  ;;  %v306_v6 = vld [vmem:[%s2914_s6 + $0x20] sm:$0xff]  ;;  %s2953_s24 = scalar_lea.vmem [#allocation7], %s1855_s18  ;;  %s1905_s22 = sshll.u32 %s2657_s15, 11 }
  0x7f   : > { %v2174_v5 = vpack.c.bf16 %v305_v4, %v304_v2  ;;  %v307_v7 = vld [vmem:[%s2914_s6 + $0x28] sm:$0xff]  ;;  %v286_v9 = vld [vmem:[%s2906_s29] sm:$0xff]  ;;  %v308_v10 = vld [vmem:[%s2914_s6 + $0x30] sm:$0xff]  ;;  %s1712_s28 = sshll.u32 %s3645_s5, 4  ;;  %s3679_s10 = scalar_lea.hbm %s3736_s3, %s1905_s22  ;;  %s3681_s28 = int_to_ptr.vmem [resolvable:$true] %s1712_s28 }
  0x80   : > { %2171 = vmatprep.subr.bf16.mxu0 %v2170_v3  ;;  %v2178_v8 = vpack.c.bf16 %v307_v7, %v306_v6  ;;  %v309_v11 = vld [vmem:[%s2914_s6 + $0x38] sm:$0xff]  ;;  %2034 = vmatprep.mubr.f32.mxu0 %v286_v9  ;;  %v310_v13 = vld [vmem:[%s2914_s6 + $0x40] sm:$0xff]  ;;  %v311_v14 = vld [vmem:[%s2914_s6 + $0x48] sm:$0xff]  ;;  %s1697_s15 = scalar_lea.sflag [#allocation4], %s2900_s0  ;;  %s2579_s30 = scalar_lea.vmem %s3681_s28, 2048 }
  0x81   : > { %2173 = vmatpush3.bf16.msra.mxu0 %v2170_v3  ;;  %v2182_v12 = vpack.c.bf16 %v309_v11, %v308_v10  ;;  %v2186_v15 = vpack.c.bf16 %v311_v14, %v310_v13  ;;  %v312_v16 = vld [vmem:[%s2914_s6 + $0x50] sm:$0xff]  ;;  %v313_v17 = vld [vmem:[%s2914_s6 + $0x58] sm:$0xff]  ;;  %v314_v19 = vld [vmem:[%s2914_s6 + $0x60] sm:$0xff]  ;;  %p2580_p0 = scmp.ne.s32.totalorder %s3681_s28, %s2579_s30  ;;  %p3762_p10 = scmp.ne.s32.totalorder %s3749_s25, 0 }
  0x82   : > { %2175 = vmatprep.subr.bf16.mxu0 %v2174_v5  ;;  %v2190_v18 = vpack.c.bf16 %v313_v17, %v312_v16  ;;  %v315_v20 = vld [vmem:[%s2914_s6 + $0x68] sm:$0xff]  ;;  %v316_v22 = vld [vmem:[%s2914_s6 + $0x70] sm:$0xff]  ;;  %v317_v23 = vld [vmem:[%s2914_s6 + $0x78] sm:$0xff]  ;;  %s2672_s7 = smov [#allocation8]  }
  0x83   : > { %v2194_v21 = vpack.c.bf16 %v315_v20, %v314_v19  ;;  %v2198_v24 = vpack.c.bf16 %v317_v23, %v316_v22  ;;  %v287_v25 = vld [vmem:[%s2906_s29 + $0x8] sm:$0xff]  ;;  %v288_v26 = vld [vmem:[%s2906_s29 + $0x10] sm:$0xff]  ;;  %v289_v27 = vld [vmem:[%s2906_s29 + $0x18] sm:$0xff]  ;;  %p2581_p8 = pnand %p2580_p0, %p3762_p10  ;;  %s2583_s20 = sshll.u32 %s2672_s7, 4  ;;  %s2584_s20 = int_to_ptr.vmem [resolvable:$false] %s2583_s20 }
  0x84   : > { %v290_v28 = vld [vmem:[%s2906_s29 + $0x20] sm:$0xff]  ;;  %v291_v29 = vld [vmem:[%s2906_s29 + $0x28] sm:$0xff]  ;;  %v292_v30 = vld [vmem:[%s2906_s29 + $0x30] sm:$0xff]  ;;  %s2585_s23 = scalar_lea.vmem %s2584_s20, 4096  ;;  %p2586_p12 = scmp.lt.s32.totalorder %s3681_s28, %s2584_s20 }
  0x85   : > { %2177 = vmatpush3.bf16.msra.mxu0 %v2174_v5  ;;  %v293_v31 = vld [vmem:[%s2906_s29 + $0x38] sm:$0xff]  ;;  %v294_v32 = vld [vmem:[%s2906_s29 + $0x40] sm:$0xff]  ;;  %v295_v33 = vld [vmem:[%s2906_s29 + $0x48] sm:$0xff]  ;;  %p2582_p9 = pneg %p2581_p8  ;;  %p2587_p1 = scmp.lt.s32.totalorder %s2585_s23, %s2579_s30 }
  0x86   : > { %2179 = vmatprep.subr.bf16.mxu0 %v2178_v8  ;;  %v296_v34 = vld [vmem:[%s2906_s29 + $0x50] sm:$0xff]  ;;  %v297_v35 = vld [vmem:[%s2906_s29 + $0x58] sm:$0xff]  ;;  %v298_v36 = vld [vmem:[%s2906_s29 + $0x60] sm:$0xff] }
  0x87   : > { %v299_v37 = vld [vmem:[%s2906_s29 + $0x68] sm:$0xff]  ;;  %v300_v38 = vld [vmem:[%s2906_s29 + $0x70] sm:$0xff]  ;;  %v301_v39 = vld [vmem:[%s2906_s29 + $0x78] sm:$0xff]  ;;  %p2588_p6 = por %p2587_p1, %p2586_p12 }
  0x88   : > { %v2956_v40 = vld [vmem:[%s2953_s24] ss:$0 sm:$0xff]  ;;  %v1861_v57 = vld [vmem:[%s2914_s6 + $0x88] sm:$0xff]  ;;  %v1863_v1 = vld [vmem:[%s2914_s6 + $0x98] sm:$0xff] }
  0x89   : > { %2181 = vmatpush3.bf16.msra.mxu0 %v2178_v8  ;;  %v1860_v56 = vld [vmem:[%s2914_s6 + $0x80] sm:$0xff]  ;;  %v1862_v0 = vld [vmem:[%s2914_s6 + $0x90] sm:$0xff]  ;;  %v1865_v7 = vld [vmem:[%s2914_s6 + $0xa8] sm:$0xff]  ;;  %p2589_p13 = pnand %p2588_p6, %p2582_p9 }
  0x8a   : > { %2183 = vmatprep.subr.bf16.mxu0 %v2182_v12  ;;  %v2202_v60 = vpack.c.bf16 %v1861_v57, %v1860_v56  ;;  %v2206_v3 = vpack.c.bf16 %v1863_v1, %v1862_v0  ;;  %v1864_v6 = vld [vmem:[%s2914_s6 + $0xa0] sm:$0xff]  ;;  %v1866_v14 = vld [vmem:[%s2914_s6 + $0xb0] sm:$0xff] }
  0x8b   : > { %v2210_v10 = vpack.c.bf16 %v1865_v7, %v1864_v6  ;;  %v1868_v20 = vld [vmem:[%s2914_s6 + $0xc0] sm:$0xff] }
  0x8c   : > { %2203 = vmatprep.subr.bf16.mxu1 %v2202_v60 }
  0x8d   : > { %2185 = vmatpush3.bf16.msra.mxu0 %v2182_v12  ;;  %2205 = vmatpush3.bf16.msra.mxu1 %v2202_v60 }
  0x8e   : > { %2187 = vmatprep.subr.bf16.mxu0 %v2186_v15  ;;  %2207 = vmatprep.subr.bf16.mxu1 %v2206_v3 }
  0x91   : > { %2189 = vmatpush3.bf16.msra.mxu0 %v2186_v15  ;;  %2209 = vmatpush3.bf16.msra.mxu1 %v2206_v3  ;;  %v1867_v15 = vld [vmem:[%s2914_s6 + $0xb8] sm:$0xff] }
  0x92   : > { %2191 = vmatprep.subr.bf16.mxu0 %v2190_v18  ;;  %2211 = vmatprep.subr.bf16.mxu1 %v2210_v10  ;;  %v2214_v17 = vpack.c.bf16 %v1867_v15, %v1866_v14 }
  0x95   : > { %2193 = vmatpush3.bf16.msra.mxu0 %v2190_v18  ;;  %2213 = vmatpush3.bf16.msra.mxu1 %v2210_v10 }
  0x96   : > { %2195 = vmatprep.subr.bf16.mxu0 %v2194_v21  ;;  %2215 = vmatprep.subr.bf16.mxu1 %v2214_v17 }
  0x99   : > { %2197 = vmatpush3.bf16.msra.mxu0 %v2194_v21  ;;  %2217 = vmatpush3.bf16.msra.mxu1 %v2214_v17  ;;  %v1869_v21 = vld [vmem:[%s2914_s6 + $0xc8] sm:$0xff] }
  0x9a   : > { %2199 = vmatprep.subr.bf16.mxu0 %v2198_v24 }
  0x9d   : > { %2201 = vmatpush3.bf16.msra.mxu0 %v2198_v24  ;;  %v2218_v24 = vpack.c.bf16 %v1869_v21, %v1868_v20 }
  0x9f   : > { %2219 = vmatprep.subr.bf16.mxu1 %v2218_v24 }
  0xa0   : > { %2035 = vmatmul.mubr.f32.vlgmr.msra.gmra.mrb[0].mxu0 %v287_v25  ;;  %2221 = vmatpush3.bf16.msra.mxu1 %v2218_v24 }
  0xa1   : > { %2037 = vmatprep.mubr.f32.mxu0 %v288_v26 }
  0xa4   : > { %2038 = vmatmul.mubr.f32.gmra.mrb[2].mxu0 %v289_v27  ;;  %v1870_v27 = vld [vmem:[%s2914_s6 + $0xd0] sm:$0xff] }
  0xa5   : > { %2040 = vmatprep.mubr.f32.mxu0 %v290_v28  ;;  %v1871_v28 = vld [vmem:[%s2914_s6 + $0xd8] sm:$0xff] }
  0xa8   : > { %2041 = vmatmul.mubr.f32.gmra.mrb[4].mxu0 %v291_v29  ;;  %v2222_v29 = vpack.c.bf16 %v1871_v28, %v1870_v27 }
  0xa9   : > { %2043 = vmatprep.mubr.f32.mxu0 %v292_v30 }
  0xaa   : > { %2223 = vmatprep.subr.bf16.mxu1 %v2222_v29 }
  0xab   : > { %2225 = vmatpush3.bf16.msra.mxu1 %v2222_v29 }
  0xac   : > { %2044 = vmatmul.mubr.f32.gmra.mrb[6].mxu0 %v293_v31 }
  0xad   : > { %2046 = vmatprep.mubr.f32.mxu0 %v294_v32  ;;  %v1872_v32 = vld [vmem:[%s2914_s6 + $0xe0] sm:$0xff] }
  0xb0   : > { %2047 = vmatmul.mubr.f32.gmra.mrb[8].mxu0 %v295_v33  ;;  %v1873_v33 = vld [vmem:[%s2914_s6 + $0xe8] sm:$0xff] }
  0xb1   : > { %2049 = vmatprep.mubr.f32.mxu0 %v296_v34  ;;  %v2226_v34 = vpack.c.bf16 %v1873_v33, %v1872_v32  ;;  %v3082_v32 = vld [vmem:[%s2953_s24 + $0x1] ss:$0 sm:$0xff] }
  0xb3   : > { %2227 = vmatprep.subr.bf16.mxu1 %v2226_v34 }
  0xb4   : > { %2050 = vmatmul.mubr.f32.gmra.mrb[10].mxu0 %v297_v35  ;;  %2229 = vmatpush3.bf16.msra.mxu1 %v2226_v34 }
  0xb5   : > { %2052 = vmatprep.mubr.f32.mxu0 %v298_v36 }
  0xb8   : > { %2053 = vmatmul.mubr.f32.gmra.mrb[12].mxu0 %v299_v37  ;;  %v1874_v37 = vld [vmem:[%s2914_s6 + $0xf0] sm:$0xff] }
  0xb9   : > { %2055 = vmatprep.mubr.f32.mxu0 %v300_v38  ;;  %v1875_v38 = vld [vmem:[%s2914_s6 + $0xf8] sm:$0xff] }
  0xbc   : > { %2056 = vmatmul.mubr.f32.gmra.mrb[14].mxu0 %v301_v39  ;;  %v2230_v39 = vpack.c.bf16 %v1875_v38, %v1874_v37 }
  0xbe   : > { %2231 = vmatprep.subr.bf16.mxu1 %v2230_v39 }
  0xbf   : > { %2233 = vmatpush3.bf16.msra.mxu1 %v2230_v39 }
 0x173   : > { %v2036_v41 = vpop.f32.mrb[0].mxu0 }
 0x174   : > { %v2959_v42 = vadd.f32 %v2036_v41, %v2956_v40  ;;  %v391_v43 = vpop.f32.mrb[1].mxu0 }
 0x175   : > { %v2962_v44 = vadd.f32 %v2956_v40, %v391_v43 }
 0x176   : > { %472 = vadd.xlane.f32.xlu0 %v2959_v42  ;;  %v503_v45 = vmul.f32 %v2959_v42, %v2959_v42 }
 0x177   : > { %v2039_v46 = vpop.f32.mrb[2].mxu0  ;;  %v502_v49 = vmul.f32 %v2962_v44, %v2962_v44 }
 0x178   : > { %520 = vadd.xlane.f32.xlu1 %v503_v45  ;;  %v401_v47 = vpop.f32.mrb[3].mxu0  ;;  %v2974_v51 = vadd.f32 %v2039_v46, %v2956_v40 }
 0x179   : > { %v2969_v48 = vadd.f32 %v2956_v40, %v401_v47 }
 0x17a   : > { %470 = vadd.xlane.f32.xlu0 %v2962_v44  ;;  %v505_v59 = vmul.f32 %v2974_v51, %v2974_v51 }
 0x17b   : > { %v2042_v50 = vpop.f32.mrb[4].mxu0  ;;  %v504_v53 = vmul.f32 %v2969_v48, %v2969_v48 }
 0x17c   : > { %518 = vadd.xlane.f32.xlu1 %v502_v49  ;;  %v411_v52 = vpop.f32.mrb[5].mxu0  ;;  %v2988_v62 = vadd.f32 %v2042_v50, %v2956_v40 }
 0x17d   : > { %v2983_v58 = vadd.f32 %v2956_v40, %v411_v52 }
 0x17e   : > { %474 = vadd.xlane.f32.xlu0 %v2969_v48  ;;  %v507_v9 = vmul.f32 %v2988_v62, %v2988_v62 }
 0x17f   : > { %v2045_v54 = vpop.f32.mrb[6].mxu0  ;;  %v506_v2 = vmul.f32 %v2983_v58, %v2983_v58 }
 0x180   : > { %476 = vadd.xlane.f32.xlu1 %v2974_v51  ;;  %v421_v55 = vpop.f32.mrb[7].mxu0  ;;  %v3004_v12 = vadd.f32 %v2045_v54, %v2956_v40 }
 0x181   : > { %v2999_v8 = vadd.f32 %v2956_v40, %v421_v55 }
 0x182   : > { %522 = vadd.xlane.f32.xlu0 %v504_v53  ;;  %v509_v23 = vmul.f32 %v3004_v12, %v3004_v12 }
 0x183   : > { %v2048_v61 = vpop.f32.mrb[8].mxu0  ;;  %v508_v16 = vmul.f32 %v2999_v8, %v2999_v8 }
 0x184   : > { %524 = vadd.xlane.f32.xlu1 %v505_v59  ;;  %v431_v63 = vpop.f32.mrb[9].mxu0  ;;  %v3020_v25 = vadd.f32 %v2048_v61, %v2956_v40 }
 0x185   : > { %v3015_v22 = vadd.f32 %v2956_v40, %v431_v63 }
 0x186   : > { %478 = vadd.xlane.f32.xlu0 %v2983_v58  ;;  %v511_v31 = vmul.f32 %v3020_v25, %v3020_v25 }
 0x187   : > { %v2051_v4 = vpop.f32.mrb[10].mxu0  ;;  %v510_v26 = vmul.f32 %v3015_v22, %v3015_v22 }
 0x188   : > { %480 = vadd.xlane.f32.xlu1 %v2988_v62  ;;  %v441_v5 = vpop.f32.mrb[11].mxu0  ;;  %v3036_v35 = vadd.f32 %v2051_v4, %v2956_v40 }
 0x189   : > { %v3029_v30 = vadd.f32 %v2956_v40, %v441_v5 }
 0x18a   : > { %526 = vadd.xlane.f32.xlu0 %v506_v2  ;;  %v513_v41 = vmul.f32 %v3036_v35, %v3036_v35 }
 0x18b   : > { %v2054_v11 = vpop.f32.mrb[12].mxu0  ;;  %v512_v36 = vmul.f32 %v3029_v30, %v3029_v30 }
 0x18c   : > { %528 = vadd.xlane.f32.xlu1 %v507_v9  ;;  %v451_v13 = vpop.f32.mrb[13].mxu0  ;;  %v3050_v45 = vadd.f32 %v2054_v11, %v2956_v40 }
 0x18d   : > { %v3047_v43 = vadd.f32 %v2956_v40, %v451_v13 }
 0x18e   : > { %482 = vadd.xlane.f32.xlu0 %v2999_v8  ;;  %v515_v47 = vmul.f32 %v3050_v45, %v3050_v45 }
 0x18f   : > { %v2057_v18 = vpop.f32.mrb[14].mxu0  ;;  %v514_v46 = vmul.f32 %v3047_v43, %v3047_v43 }
 0x190   : > { %484 = vadd.xlane.f32.xlu1 %v3004_v12  ;;  %v461_v19 = vpop.f32.mrb[15].mxu0  ;;  %v3062_v50 = vadd.f32 %v2057_v18, %v2956_v40 }
 0x191   : > { %v3059_v49 = vadd.f32 %v2956_v40, %v461_v19 }
 0x192   : > { %530 = vadd.xlane.f32.xlu0 %v508_v16  ;;  %v517_v53 = vmul.f32 %v3062_v50, %v3062_v50 }
 0x193   : > { %v516_v52 = vmul.f32 %v3059_v49, %v3059_v49 }
 0x194   : > { %532 = vadd.xlane.f32.xlu1 %v509_v23 }
 0x196   : > { %486 = vadd.xlane.f32.xlu0 %v3015_v22 }
 0x198   : > { %488 = vadd.xlane.f32.xlu1 %v3020_v25 }
 0x19a   : > { %534 = vadd.xlane.f32.xlu0 %v510_v26 }
 0x19c   : > { %536 = vadd.xlane.f32.xlu1 %v511_v31 }
 0x19e   : > { %490 = vadd.xlane.f32.xlu0 %v3029_v30 }
 0x1a0   : > { %492 = vadd.xlane.f32.xlu1 %v3036_v35 }
 0x1a2   : > { %538 = vadd.xlane.f32.xlu0 %v512_v36 }
 0x1a4   : > { %540 = vadd.xlane.f32.xlu1 %v513_v41 }
 0x1a6   : > { %494 = vadd.xlane.f32.xlu0 %v3047_v43 }
 0x1a8   : > { %496 = vadd.xlane.f32.xlu1 %v3050_v45 }
 0x1aa   : > { %542 = vadd.xlane.f32.xlu0 %v514_v46 }
 0x1ac   : > { %544 = vadd.xlane.f32.xlu1 %v515_v47 }
 0x1ae   : > { %498 = vadd.xlane.f32.xlu0 %v3059_v49 }
 0x1b0   : > { %500 = vadd.xlane.f32.xlu1 %v3062_v50 }
 0x1b2   : > { %546 = vadd.xlane.f32.xlu0 %v516_v52  ;;  %v3089_v52 = vld [vmem:[%s2953_s24 + $0x2] ss:$0 sm:$0xff] }
 0x1b4   : > { %548 = vadd.xlane.f32.xlu1 %v517_v53 }
 0x203   : > { %v473_v54 = vpop.xlane.xlu0 %472 }
 0x204   : > { %v551_v55 = vmul.f32 0.0078125, %v473_v54 }
 0x205   : > { %v521_v56 = vpop.xlane.xlu1 %520 }
 0x206   : > { %v583_v57 = vmul.f32 %v551_v55, %v551_v55  ;;  %v567_v59 = vmul.f32 0.0078125, %v521_v56  ;;  %v615_v23 = vsub.f32 %v2959_v42, %v551_v55 }
 0x207   : > { %v471_v40 = vpop.xlane.xlu0 %470 }
 0x208   : > { %v599_v60 = vsub.f32 %v567_v59, %v583_v57  ;;  %v550_v61 = vmul.f32 0.0078125, %v471_v40 }
 0x209   : > { %v519_v63 = vpop.xlane.xlu1 %518 }
 0x20a   : > { %v631_v0 = vadd.f32 1e-05, %v599_v60  ;;  %v582_v1 = vmul.f32 %v550_v61, %v550_v61  ;;  %v566_v2 = vmul.f32 0.0078125, %v519_v63  ;;  %v614_v36 = vsub.f32 %v2962_v44, %v550_v61 }
 0x20b   : > { %v475_v3 = vpop.xlane.xlu0 %474 }
 0x20c   : > { %2361 = vrsqrt.f32 %v631_v0  ;;  %v598_v4 = vsub.f32 %v566_v2, %v582_v1  ;;  %v552_v5 = vmul.f32 0.0078125, %v475_v3 }
 0x20d   : > { %v477_v6 = vpop.xlane.xlu1 %476 }
 0x20e   : > { %v630_v7 = vadd.f32 1e-05, %v598_v4  ;;  %v584_v9 = vmul.f32 %v552_v5, %v552_v5  ;;  %v3070_v10 = vmul.f32 0.0078125, %v477_v6  ;;  %v616_v61 = vsub.f32 %v2969_v48, %v552_v5 }
 0x20f   : > { %v523_v11 = vpop.xlane.xlu0 %522 }
 0x210   : > { %2363 = vrsqrt.f32 %v630_v7  ;;  %v568_v13 = vmul.f32 0.0078125, %v523_v11  ;;  %v585_v15 = vmul.f32 %v3070_v10, %v3070_v10  ;;  %v617_v4 = vsub.f32 %v2974_v51, %v3070_v10 }
 0x211   : > { %v525_v14 = vpop.xlane.xlu1 %524 }
 0x212   : > { %v600_v16 = vsub.f32 %v568_v13, %v584_v9  ;;  %v569_v17 = vmul.f32 0.0078125, %v525_v14 }
 0x213   : > { %v479_v18 = vpop.xlane.xlu0 %478 }
 0x214   : > { %v632_v19 = vadd.f32 1e-05, %v600_v16  ;;  %v601_v20 = vsub.f32 %v569_v17, %v585_v15  ;;  %v3074_v21 = vmul.f32 0.0078125, %v479_v18 }
 0x215   : > { %v481_v24 = vpop.xlane.xlu1 %480 }
 0x216   : > { %v2362_v26 = vpop.eup %2361  ;;  %2365 = vrsqrt.f32 %v632_v19  ;;  %v633_v27 = vadd.f32 1e-05, %v601_v20  ;;  %v586_v28 = vmul.f32 %v3074_v21, %v3074_v21  ;;  %v3079_v29 = vmul.f32 0.0078125, %v481_v24 }
 0x217   : > { %v527_v31 = vpop.xlane.xlu0 %526  ;;  %v663_v33 = vmul.f32 %v2362_v26, %v615_v23 }
 0x218   : > { %2367 = vrsqrt.f32 %v633_v27  ;;  %v570_v34 = vmul.f32 0.0078125, %v527_v31  ;;  %v587_v38 = vmul.f32 %v3079_v29, %v3079_v29  ;;  %v618_v27 = vsub.f32 %v2983_v58, %v3074_v21 }
 0x219   : > { %v529_v37 = vpop.xlane.xlu1 %528  ;;  %v683_v46 = vmul.f32 %v3082_v32, %v663_v33 }
 0x21a   : > { %v2364_v42 = vpop.eup %2363  ;;  %v602_v39 = vsub.f32 %v570_v34, %v586_v28  ;;  %v571_v41 = vmul.f32 0.0078125, %v529_v37 }
 0x21b   : > { %v483_v47 = vpop.xlane.xlu0 %482  ;;  %v662_v53 = vmul.f32 %v2364_v42, %v614_v36  ;;  %v703_v60 = vadd.f32 %v3089_v52, %v683_v46  ;;  %v619_v42 = vsub.f32 %v2988_v62, %v3079_v29 }
 0x21c   : > { %v634_v54 = vadd.f32 1e-05, %v602_v39  ;;  %v603_v55 = vsub.f32 %v571_v41, %v587_v38  ;;  %v3091_v56 = vmul.f32 0.0078125, %v483_v47 }
 0x21d   : > { %v485_v57 = vpop.xlane.xlu1 %484  ;;  %v682_v44 = vmul.f32 %v3082_v32, %v662_v53  ;;  %v719_v5 = vmax.f32 %v703_v60, 0.0 }
 0x21e   : > { %2369 = vrsqrt.f32 %v634_v54  ;;  %v635_v59 = vadd.f32 1e-05, %v603_v55  ;;  %v588_v40 = vmul.f32 %v3091_v56, %v3091_v56  ;;  %v3098_v63 = vmul.f32 0.0078125, %v485_v57 }
 0x21f   : > { %v531_v0 = vpop.xlane.xlu0 %530  ;;  %v702_v1 = vadd.f32 %v3089_v52, %v682_v44 }
 0x220   : > { %v2366_v2 = vpop.eup %2365  ;;  %2371 = vrsqrt.f32 %v635_v59  ;;  %v572_v3 = vmul.f32 0.0078125, %v531_v0  ;;  %v589_v13 = vmul.f32 %v3098_v63, %v3098_v63  ;;  %v620_v0 = vsub.f32 %v2999_v8, %v3091_v56 }
 0x221   : > { %v533_v6 = vpop.xlane.xlu1 %532  ;;  %v718_v7 = vmax.f32 %v702_v1, 0.0  ;;  %v664_v9 = vmul.f32 %v2366_v2, %v616_v61 }
 0x222   : > { %v2368_v11 = vpop.eup %2367  ;;  %v604_v14 = vsub.f32 %v572_v3, %v588_v40  ;;  %v573_v48 = vmul.f32 0.0078125, %v533_v6 }
 0x223   : > { %v487_v15 = vpop.xlane.xlu0 %486  ;;  %2090 = vmatprep.mubr.f32.mxu1 %v718_v7  ;;  %v684_v16 = vmul.f32 %v3082_v32, %v664_v9  ;;  %v665_v17 = vmul.f32 %v2368_v11, %v617_v4  ;;  %v621_v9 = vsub.f32 %v3004_v12, %v3098_v63 }
 0x224   : > { %v636_v18 = vadd.f32 1e-05, %v604_v14  ;;  %v605_v19 = vsub.f32 %v573_v48, %v589_v13  ;;  %v3106_v20 = vmul.f32 0.0078125, %v487_v15  ;;  %2091 = vmatmul.mubr.f32.vlgmr.msra.gmra.mrb[0].mxu1 %v719_v5 }
 0x225   : > { %v489_v51 = vpop.xlane.xlu1 %488  ;;  %v704_v10 = vadd.f32 %v3089_v52, %v684_v16  ;;  %v685_v23 = vmul.f32 %v3082_v32, %v665_v17 }
 0x226   : > { %2373 = vrsqrt.f32 %v636_v18  ;;  %v637_v24 = vadd.f32 1e-05, %v605_v19  ;;  %v590_v26 = vmul.f32 %v3106_v20, %v3106_v20  ;;  %v3114_v28 = vmul.f32 0.0078125, %v489_v51 }
 0x227   : > { %v535_v31 = vpop.xlane.xlu0 %534  ;;  %v720_v33 = vmax.f32 %v704_v10, 0.0  ;;  %v705_v34 = vadd.f32 %v3089_v52, %v685_v23 }
 0x228   : > { %v2370_v36 = vpop.eup %2369  ;;  %2375 = vrsqrt.f32 %v637_v24  ;;  %v574_v37 = vmul.f32 0.0078125, %v535_v31  ;;  %v591_v58 = vmul.f32 %v3114_v28, %v3114_v28 }
 0x229   : > { %2093 = vmatprep.mubr.f32.mxu1 %v720_v33  ;;  %v537_v38 = vpop.xlane.xlu1 %536  ;;  %v721_v39 = vmax.f32 %v705_v34, 0.0  ;;  %v666_v41 = vmul.f32 %v2370_v36, %v618_v27 }
 0x22a   : > { %v2372_v46 = vpop.eup %2371  ;;  %v606_v21 = vsub.f32 %v574_v37, %v590_v26  ;;  %v575_v47 = vmul.f32 0.0078125, %v537_v38  ;;  %v622_v26 = vsub.f32 %v3015_v22, %v3106_v20 }
 0x22b   : > { %v491_v53 = vpop.xlane.xlu0 %490  ;;  %2094 = vmatmul.mubr.f32.gmra.mrb[2].mxu1 %v721_v39  ;;  %v686_v54 = vmul.f32 %v3082_v32, %v666_v41  ;;  %v667_v55 = vmul.f32 %v2372_v46, %v619_v42  ;;  %v623_v42 = vsub.f32 %v3020_v25, %v3114_v28 }
 0x22c   : > { %v638_v57 = vadd.f32 1e-05, %v606_v21  ;;  %v607_v44 = vsub.f32 %v575_v47, %v591_v58  ;;  %v3122_v59 = vmul.f32 0.0078125, %v491_v53 }
 0x22d   : > { %v493_v62 = vpop.xlane.xlu1 %492  ;;  %v706_v29 = vadd.f32 %v3089_v52, %v686_v54  ;;  %v687_v40 = vmul.f32 %v3082_v32, %v667_v55 }
 0x22e   : > { %2377 = vrsqrt.f32 %v638_v57  ;;  %v639_v60 = vadd.f32 1e-05, %v607_v44  ;;  %v592_v61 = vmul.f32 %v3122_v59, %v3122_v59  ;;  %v3130_v1 = vmul.f32 0.0078125, %v493_v62 }
 0x22f   : > { %v539_v2 = vpop.xlane.xlu0 %538  ;;  %v722_v3 = vmax.f32 %v706_v29, 0.0  ;;  %v707_v4 = vadd.f32 %v3089_v52, %v687_v40  ;;  %v624_v40 = vsub.f32 %v3029_v30, %v3122_v59 }
 0x230   : > { %v2374_v6 = vpop.eup %2373  ;;  %2379 = vrsqrt.f32 %v639_v60  ;;  %v576_v7 = vmul.f32 0.0078125, %v539_v2  ;;  %v593_v11 = vmul.f32 %v3130_v1, %v3130_v1 }
 0x231   : > { %2096 = vmatprep.mubr.f32.mxu1 %v722_v3  ;;  %v541_v13 = vpop.xlane.xlu1 %540  ;;  %v723_v14 = vmax.f32 %v707_v4, 0.0  ;;  %v668_v48 = vmul.f32 %v2374_v6, %v620_v0  ;;  %v625_v6 = vsub.f32 %v3036_v35, %v3130_v1 }
 0x232   : > { %v2376_v8 = vpop.eup %2375  ;;  %v608_v56 = vsub.f32 %v576_v7, %v592_v61  ;;  %v577_v5 = vmul.f32 0.0078125, %v541_v13 }
 0x233   : > { %v495_v15 = vpop.xlane.xlu0 %494  ;;  %2097 = vmatmul.mubr.f32.gmra.mrb[4].mxu1 %v723_v14  ;;  %v688_v16 = vmul.f32 %v3082_v32, %v668_v48  ;;  %v669_v17 = vmul.f32 %v2376_v8, %v621_v9 }
 0x234   : > { %v640_v18 = vadd.f32 1e-05, %v608_v56  ;;  %v609_v19 = vsub.f32 %v577_v5, %v593_v11  ;;  %v3138_v51 = vmul.f32 0.0078125, %v495_v15 }
 0x235   : > { %v497_v12 = vpop.xlane.xlu1 %496  ;;  %v708_v63 = vadd.f32 %v3089_v52, %v688_v16  ;;  %v689_v10 = vmul.f32 %v3082_v32, %v669_v17 }
 0x236   : > { %2381 = vrsqrt.f32 %v640_v18  ;;  %v641_v23 = vadd.f32 1e-05, %v609_v19  ;;  %v594_v24 = vmul.f32 %v3138_v51, %v3138_v51  ;;  %v3146_v27 = vmul.f32 0.0078125, %v497_v12 }
 0x237   : > { %v543_v31 = vpop.xlane.xlu0 %542  ;;  %v724_v33 = vmax.f32 %v708_v63, 0.0  ;;  %v709_v34 = vadd.f32 %v3089_v52, %v689_v10  ;;  %v626_v1 = vsub.f32 %v3047_v43, %v3138_v51 }
 0x238   : > { %v2378_v36 = vpop.eup %2377  ;;  %2383 = vrsqrt.f32 %v641_v23  ;;  %v578_v37 = vmul.f32 0.0078125, %v543_v31  ;;  %v595_v38 = vmul.f32 %v3146_v27, %v3146_v27  ;;  %v627_v12 = vsub.f32 %v3050_v45, %v3146_v27 }
 0x239   : > { %2099 = vmatprep.mubr.f32.mxu1 %v724_v33  ;;  %v545_v39 = vpop.xlane.xlu1 %544  ;;  %v725_v41 = vmax.f32 %v709_v34, 0.0  ;;  %v670_v46 = vmul.f32 %v2378_v36, %v622_v26 }
 0x23a   : > { %v2380_v22 = vpop.eup %2379  ;;  %v610_v20 = vsub.f32 %v578_v37, %v594_v24  ;;  %v579_v58 = vmul.f32 0.0078125, %v545_v39 }
 0x23b   : > { %v499_v21 = vpop.xlane.xlu0 %498  ;;  %2100 = vmatmul.mubr.f32.gmra.mrb[6].mxu1 %v725_v41  ;;  %v690_v47 = vmul.f32 %v3082_v32, %v670_v46  ;;  %v671_v53 = vmul.f32 %v2380_v22, %v623_v42 }
 0x23c   : > { %v642_v54 = vadd.f32 1e-05, %v610_v20  ;;  %v611_v55 = vsub.f32 %v579_v58, %v595_v38  ;;  %v564_v57 = vmul.f32 0.0078125, %v499_v21  ;;  %v3180_v58 = vld [vmem:[%s2953_s24 + $0x3] ss:$0 sm:$0xff] }
 0x23d   : > { %v501_v44 = vpop.xlane.xlu1 %500  ;;  %v710_v25 = vadd.f32 %v3089_v52, %v690_v47  ;;  %v691_v28 = vmul.f32 %v3082_v32, %v671_v53 }
 0x23e   : > { %2385 = vrsqrt.f32 %v642_v54  ;;  %v643_v62 = vadd.f32 1e-05, %v611_v55  ;;  %v596_v29 = vmul.f32 %v564_v57, %v564_v57  ;;  %v565_v60 = vmul.f32 0.0078125, %v501_v44 }
 0x23f   : > { %v547_v61 = vpop.xlane.xlu0 %546  ;;  %v726_v0 = vmax.f32 %v710_v25, 0.0  ;;  %v711_v2 = vadd.f32 %v3089_v52, %v691_v28  ;;  %v628_v51 = vsub.f32 %v3059_v49, %v564_v57 }
 0x240   : > { %v2382_v3 = vpop.eup %2381  ;;  %2387 = vrsqrt.f32 %v643_v62  ;;  %v580_v4 = vmul.f32 0.0078125, %v547_v61  ;;  %v597_v7 = vmul.f32 %v565_v60, %v565_v60  ;;  %v629_v45 = vsub.f32 %v3062_v50, %v565_v60  ;;  %v1879_v62 = vld [vmem:[%s2914_s6 + $0x100] sm:$0xff] }
 0x241   : > { %2102 = vmatprep.mubr.f32.mxu1 %v726_v0  ;;  %v549_v9 = vpop.xlane.xlu1 %548  ;;  %v727_v11 = vmax.f32 %v711_v2, 0.0  ;;  %v672_v13 = vmul.f32 %v2382_v3, %v624_v40  ;;  %v1881_v2 = vld [vmem:[%s2914_s6 + $0x110] sm:$0xff]  ;;  %v1882_v3 = vld [vmem:[%s2914_s6 + $0x118] sm:$0xff] }
 0x242   : > { %v2384_v14 = vpop.eup %2383  ;;  %v612_v48 = vsub.f32 %v580_v4, %v596_v29  ;;  %v581_v8 = vmul.f32 0.0078125, %v549_v9  ;;  %v1880_v29 = vld [vmem:[%s2914_s6 + $0x108] sm:$0xff]  ;;  %v2238_v4 = vpack.c.bf16 %v1882_v3, %v1881_v2 }
 0x243   : > { %2103 = vmatmul.mubr.f32.gmra.mrb[8].mxu1 %v727_v11  ;;  %v692_v30 = vmul.f32 %v3082_v32, %v672_v13  ;;  %v673_v59 = vmul.f32 %v2384_v14, %v625_v6  ;;  %v2234_v40 = vpack.c.bf16 %v1880_v29, %v1879_v62  ;;  %v1884_v9 = vld [vmem:[%s2914_s6 + $0x128] sm:$0xff] }
 0x244   : > { %v644_v56 = vadd.f32 1e-05, %v612_v48  ;;  %v613_v5 = vsub.f32 %v581_v8, %v597_v7  ;;  %v1883_v7 = vld [vmem:[%s2914_s6 + $0x120] sm:$0xff] }
 0x245   : > { %v712_v15 = vadd.f32 %v3089_v52, %v692_v30  ;;  %v693_v16 = vmul.f32 %v3082_v32, %v673_v59  ;;  %2235 = vmatprep.subr.bf16.mxu0 %v2234_v40  ;;  %2266 = vmatprep.subr.bf16.mxu1 %v2234_v40  ;;  %v2242_v11 = vpack.c.bf16 %v1884_v9, %v1883_v7  ;;  %v1885_v30 = vld [vmem:[%s2914_s6 + $0x130] sm:$0xff]  ;;  %v1886_v59 = vld [vmem:[%s2914_s6 + $0x138] sm:$0xff] }
 0x246   : > { %2389 = vrsqrt.f32 %v644_v56  ;;  %v645_v35 = vadd.f32 1e-05, %v613_v5  ;;  %2237 = vmatpush3.bf16.msra.mxu0 %v2234_v40  ;;  %2274 = vmatpush3.bf16.msra.mxu1 %v2234_v40  ;;  %v2246_v56 = vpack.c.bf16 %v1886_v59, %v1885_v30 }
 0x247   : > { %v728_v17 = vmax.f32 %v712_v15, 0.0  ;;  %v713_v18 = vadd.f32 %v3089_v52, %v693_v16  ;;  %2239 = vmatprep.subr.bf16.mxu0 %v2238_v4  ;;  %2267 = vmatprep.subr.bf16.mxu1 %v2238_v4  ;;  %v1887_v16 = vld [vmem:[%s2914_s6 + $0x140] sm:$0xff] }
 0x248   : > { %v2386_v19 = vpop.eup %2385  ;;  %2391 = vrsqrt.f32 %v645_v35  ;;  %v1888_v35 = vld [vmem:[%s2914_s6 + $0x148] sm:$0xff] }
 0x249   : > { %2105 = vmatprep.mubr.f32.mxu1 %v728_v17  ;;  %v729_v63 = vmax.f32 %v713_v18, 0.0  ;;  %v674_v10 = vmul.f32 %v2386_v19, %v626_v1  ;;  %v2250_v1 = vpack.c.bf16 %v1888_v35, %v1887_v16 }
 0x24a   : > { %v2388_v23 = vpop.eup %2387  ;;  %2241 = vmatpush3.bf16.msra.mxu0 %v2238_v4  ;;  %2275 = vmatpush3.bf16.msra.mxu1 %v2238_v4 }
 0x24b   : > { %2106 = vmatmul.mubr.f32.gmra.mrb[10].mxu1 %v729_v63  ;;  %v694_v24 = vmul.f32 %v3082_v32, %v674_v10  ;;  %v675_v26 = vmul.f32 %v2388_v23, %v627_v12  ;;  %2243 = vmatprep.subr.bf16.mxu0 %v2242_v11  ;;  %v1889_v63 = vld [vmem:[%s2914_s6 + $0x150] sm:$0xff]  ;;  %v1890_v10 = vld [vmem:[%s2914_s6 + $0x158] sm:$0xff] }
 0x24c   : > { %2268 = vmatprep.subr.bf16.mxu1 %v2242_v11  ;;  %v2254_v23 = vpack.c.bf16 %v1890_v10, %v1889_v63 }
 0x24d   : > { %v714_v31 = vadd.f32 %v3089_v52, %v694_v24  ;;  %v695_v43 = vmul.f32 %v3082_v32, %v675_v26 }
 0x24e   : > { %2245 = vmatpush3.bf16.msra.mxu0 %v2242_v11  ;;  %2276 = vmatpush3.bf16.msra.mxu1 %v2242_v11 }
 0x24f   : > { %v730_v33 = vmax.f32 %v714_v31, 0.0  ;;  %v715_v34 = vadd.f32 %v3089_v52, %v695_v43  ;;  %2247 = vmatprep.subr.bf16.mxu0 %v2246_v56  ;;  %2269 = vmatprep.subr.bf16.mxu1 %v2246_v56  ;;  %v1891_v31 = vld [vmem:[%s2914_s6 + $0x160] sm:$0xff]  ;;  %v1892_v43 = vld [vmem:[%s2914_s6 + $0x168] sm:$0xff] }
 0x250   : > { %v2390_v36 = vpop.eup %2389 }
 0x251   : > { %2108 = vmatprep.mubr.f32.mxu1 %v730_v33  ;;  %v731_v27 = vmax.f32 %v715_v34, 0.0  ;;  %v676_v37 = vmul.f32 %v2390_v36, %v628_v51  ;;  %v2258_v51 = vpack.c.bf16 %v1892_v43, %v1891_v31 }
 0x252   : > { %v2392_v42 = vpop.eup %2391  ;;  %2249 = vmatpush3.bf16.msra.mxu0 %v2246_v56  ;;  %2277 = vmatpush3.bf16.msra.mxu1 %v2246_v56 }
 0x253   : > { %2109 = vmatmul.mubr.f32.gmra.mrb[12].mxu1 %v731_v27  ;;  %v696_v38 = vmul.f32 %v3082_v32, %v676_v37  ;;  %v677_v39 = vmul.f32 %v2392_v42, %v629_v45  ;;  %2251 = vmatprep.subr.bf16.mxu0 %v2250_v1  ;;  %v1893_v37 = vld [vmem:[%s2914_s6 + $0x170] sm:$0xff]  ;;  %v1894_v42 = vld [vmem:[%s2914_s6 + $0x178] sm:$0xff] }
 0x254   : > { %2270 = vmatprep.subr.bf16.mxu1 %v2250_v1 }
 0x255   : > { %v716_v41 = vadd.f32 %v3089_v52, %v696_v38  ;;  %v697_v46 = vmul.f32 %v3082_v32, %v677_v39  ;;  %v2262_v38 = vpack.c.bf16 %v1894_v42, %v1893_v37 }
 0x256   : > { %2253 = vmatpush3.bf16.msra.mxu0 %v2250_v1  ;;  %2278 = vmatpush3.bf16.msra.mxu1 %v2250_v1 }
 0x257   : > { %v732_v49 = vmax.f32 %v716_v41, 0.0  ;;  %v717_v22 = vadd.f32 %v3089_v52, %v697_v46  ;;  %2255 = vmatprep.subr.bf16.mxu0 %v2254_v23  ;;  %2271 = vmatprep.subr.bf16.mxu1 %v2254_v23 }
 0x259   : > { %2111 = vmatprep.mubr.f32.mxu1 %v732_v49  ;;  %v733_v20 = vmax.f32 %v717_v22, 0.0 }
 0x25a   : > { %2257 = vmatpush3.bf16.msra.mxu0 %v2254_v23  ;;  %2279 = vmatpush3.bf16.msra.mxu1 %v2254_v23 }
 0x25b   : > { %2112 = vmatmul.mubr.f32.gmra.mrb[14].mxu1 %v733_v20  ;;  %2259 = vmatprep.subr.bf16.mxu0 %v2258_v51 }
 0x25c   : > { %2272 = vmatprep.subr.bf16.mxu1 %v2258_v51 }
 0x25e   : > { %2261 = vmatpush3.bf16.msra.mxu0 %v2258_v51  ;;  %2280 = vmatpush3.bf16.msra.mxu1 %v2258_v51 }
 0x25f   : > { %2263 = vmatprep.subr.bf16.mxu0 %v2262_v38  ;;  %2273 = vmatprep.subr.bf16.mxu1 %v2262_v38 }
 0x262   : > { %2265 = vmatpush3.bf16.msra.mxu0 %v2262_v38  ;;  %2281 = vmatpush3.bf16.msra.mxu1 %v2262_v38 }
 0x2f7   : > { %v2092_v50 = vpop.f32.mrb[0].mxu1 }
 0x2f8   : > { %v3183_v21 = vadd.f32 %v2092_v50, %v3180_v58  ;;  %v824_v47 = vpop.f32.mrb[1].mxu1 }
 0x2f9   : > { %v3187_v53 = vadd.f32 %v3180_v58, %v824_v47 }
 0x2fa   : > { %905 = vadd.xlane.f32.xlu0 %v3183_v21  ;;  %v936_v54 = vmul.f32 %v3183_v21, %v3183_v21 }
 0x2fb   : > { %v935_v55 = vmul.f32 %v3187_v53, %v3187_v53 }
 0x2fe   : > { %903 = vadd.xlane.f32.xlu0 %v3187_v53  ;;  %v2095_v32 = vpop.f32.mrb[2].mxu1 }
 0x2ff   : > { %v834_v52 = vpop.f32.mrb[3].mxu1  ;;  %v3195_v25 = vadd.f32 %v2095_v32, %v3180_v58 }
 0x300   : > { %v3199_v28 = vadd.f32 %v3180_v58, %v834_v52 }
 0x301   : > { %v938_v0 = vmul.f32 %v3195_v25, %v3195_v25 }
 0x302   : > { %953 = vadd.xlane.f32.xlu0 %v936_v54  ;;  %v937_v6 = vmul.f32 %v3199_v28, %v3199_v28 }
 0x306   : > { %951 = vadd.xlane.f32.xlu0 %v935_v55  ;;  %v2098_v57 = vpop.f32.mrb[4].mxu1 }
 0x307   : > { %v844_v44 = vpop.f32.mrb[5].mxu1  ;;  %v3220_v8 = vadd.f32 %v2098_v57, %v3180_v58 }
 0x308   : > { %v3230_v15 = vadd.f32 %v3180_v58, %v844_v44 }
 0x309   : > { %v940_v12 = vmul.f32 %v3220_v8, %v3220_v8 }
 0x30a   : > { %909 = vadd.xlane.f32.xlu0 %v3195_v25  ;;  %v939_v26 = vmul.f32 %v3230_v15, %v3230_v15 }
 0x30e   : > { %907 = vadd.xlane.f32.xlu0 %v3199_v28  ;;  %v3204_v60 = vpop.f32.mrb[6].mxu1 }
 0x30f   : > { %v3206_v61 = vpop.f32.mrb[7].mxu1  ;;  %v3253_v45 = vadd.f32 %v3204_v60, %v3180_v58 }
 0x310   : > { %v3267_v41 = vadd.f32 %v3180_v58, %v3206_v61 }
 0x311   : > { %v942_v52 = vmul.f32 %v3253_v45, %v3253_v45 }
 0x312   : > { %957 = vadd.xlane.f32.xlu0 %v938_v0  ;;  %v941_v47 = vmul.f32 %v3267_v41, %v3267_v41 }
 0x316   : > { %955 = vadd.xlane.f32.xlu0 %v937_v6  ;;  %v2104_v13 = vpop.f32.mrb[8].mxu1 }
 0x317   : > { %v3217_v14 = vadd.f32 %v2104_v13, %v3180_v58  ;;  %v864_v48 = vpop.f32.mrb[9].mxu1 }
 0x318   : > { %v3227_v5 = vadd.f32 %v3180_v58, %v864_v48 }
 0x319   : > { %921 = vadd.xlane.f32.xlu1 %v3217_v14  ;;  %v944_v19 = vmul.f32 %v3217_v14, %v3217_v14 }
 0x31a   : > { %913 = vadd.xlane.f32.xlu0 %v3220_v8  ;;  %v943_v24 = vmul.f32 %v3227_v5, %v3227_v5 }
 0x31d   : > { %919 = vadd.xlane.f32.xlu1 %v3227_v5 }
 0x31e   : > { %911 = vadd.xlane.f32.xlu0 %v3230_v15  ;;  %v2107_v17 = vpop.f32.mrb[10].mxu1 }
 0x31f   : > { %v874_v18 = vpop.f32.mrb[11].mxu1  ;;  %v3249_v34 = vadd.f32 %v2107_v17, %v3180_v58 }
 0x320   : > { %v3263_v39 = vadd.f32 %v3180_v58, %v874_v18 }
 0x321   : > { %969 = vadd.xlane.f32.xlu1 %v944_v19  ;;  %v946_v20 = vmul.f32 %v3249_v34, %v3249_v34 }
 0x322   : > { %961 = vadd.xlane.f32.xlu0 %v940_v12  ;;  %v945_v32 = vmul.f32 %v3263_v39, %v3263_v39  ;;  %v3302_v12 = vld [vmem:[%s2953_s24 + $0x4] ss:$0 sm:$0xff] }
 0x325   : > { %967 = vadd.xlane.f32.xlu1 %v943_v24 }
 0x326   : > { %959 = vadd.xlane.f32.xlu0 %v939_v26  ;;  %v2110_v33 = vpop.f32.mrb[12].mxu1 }
 0x327   : > { %v884_v36 = vpop.f32.mrb[13].mxu1  ;;  %v3286_v54 = vadd.f32 %v2110_v33, %v3180_v58 }
 0x328   : > { %v3256_v27 = vadd.f32 %v3180_v58, %v884_v36 }
 0x329   : > { %925 = vadd.xlane.f32.xlu1 %v3249_v34  ;;  %v948_v55 = vmul.f32 %v3286_v54, %v3286_v54 }
 0x32a   : > { %917 = vadd.xlane.f32.xlu0 %v3253_v45  ;;  %v947_v57 = vmul.f32 %v3256_v27, %v3256_v27 }
 0x32d   : > { %923 = vadd.xlane.f32.xlu1 %v3263_v39 }
 0x32e   : > { %915 = vadd.xlane.f32.xlu0 %v3267_v41  ;;  %v2113_v46 = vpop.f32.mrb[14].mxu1 }
 0x32f   : > { %v3272_v49 = vadd.f32 %v2113_v46, %v3180_v58  ;;  %v894_v22 = vpop.f32.mrb[15].mxu1 }
 0x330   : > { %v3277_v50 = vadd.f32 %v3180_v58, %v894_v22 }
 0x331   : > { %973 = vadd.xlane.f32.xlu1 %v946_v20  ;;  %v950_v44 = vmul.f32 %v3272_v49, %v3272_v49 }
 0x332   : > { %963 = vadd.xlane.f32.xlu0 %v941_v47  ;;  %v949_v58 = vmul.f32 %v3277_v50, %v3277_v50 }
 0x335   : > { %971 = vadd.xlane.f32.xlu1 %v945_v32 }
 0x336   : > { %965 = vadd.xlane.f32.xlu0 %v942_v52 }
 0x339   : > { %929 = vadd.xlane.f32.xlu1 %v3286_v54 }
 0x33d   : > { %927 = vadd.xlane.f32.xlu1 %v3256_v27 }
 0x341   : > { %977 = vadd.xlane.f32.xlu1 %v948_v55 }
 0x345   : > { %975 = vadd.xlane.f32.xlu1 %v947_v57 }
 0x349   : > { %933 = vadd.xlane.f32.xlu1 %v3272_v49 }
 0x34d   : > { %931 = vadd.xlane.f32.xlu1 %v3277_v50 }
 0x351   : > { %979 = vadd.xlane.f32.xlu1 %v949_v58 }
 0x355   : > { %981 = vadd.xlane.f32.xlu1 %v950_v44 }
 0x387   : > { %v906_v62 = vpop.xlane.xlu0 %905 }
 0x388   : > { %v984_v40 = vmul.f32 0.0078125, %v906_v62 }
 0x38a   : > { %v1016_v61 = vmul.f32 %v984_v40, %v984_v40  ;;  %v1048_v56 = vsub.f32 %v3183_v21, %v984_v40  ;;  %v3307_v21 = vld [vmem:[%s2953_s24 + $0x5] ss:$0 sm:$0xff] }
 0x38b   : > { %v904_v29 = vpop.xlane.xlu0 %903 }
 0x38c   : > { %v983_v0 = vmul.f32 0.0078125, %v904_v29 }
 0x38e   : > { %v1015_v6 = vmul.f32 %v983_v0, %v983_v0  ;;  %v1047_v10 = vsub.f32 %v3187_v53, %v983_v0 }
 0x38f   : > { %v954_v60 = vpop.xlane.xlu0 %953 }
 0x390   : > { %v1000_v2 = vmul.f32 0.0078125, %v954_v60 }
 0x392   : > { %v1032_v3 = vsub.f32 %v1000_v2, %v1016_v61 }
 0x393   : > { %v952_v4 = vpop.xlane.xlu0 %951 }
 0x394   : > { %v1064_v7 = vadd.f32 1e-05, %v1032_v3  ;;  %v999_v9 = vmul.f32 0.0078125, %v952_v4 }
 0x396   : > { %2393 = vrsqrt.f32 %v1064_v7  ;;  %v1031_v11 = vsub.f32 %v999_v9, %v1015_v6 }
 0x397   : > { %v910_v13 = vpop.xlane.xlu0 %909 }
 0x398   : > { %v1063_v48 = vadd.f32 1e-05, %v1031_v11  ;;  %v986_v59 = vmul.f32 0.0078125, %v910_v13 }
 0x39a   : > { %2395 = vrsqrt.f32 %v1063_v48  ;;  %v1018_v1 = vmul.f32 %v986_v59, %v986_v59  ;;  %v1050_v44 = vsub.f32 %v3195_v25, %v986_v59 }
 0x39b   : > { %v908_v30 = vpop.xlane.xlu0 %907 }
 0x39c   : > { %v985_v17 = vmul.f32 0.0078125, %v908_v30 }
 0x39e   : > { %v1017_v26 = vmul.f32 %v985_v17, %v985_v17  ;;  %v1049_v25 = vsub.f32 %v3199_v28, %v985_v17 }
 0x39f   : > { %v958_v16 = vpop.xlane.xlu0 %957 }
 0x3a0   : > { %v2394_v35 = vpop.eup %2393  ;;  %v1002_v18 = vmul.f32 0.0078125, %v958_v16 }
 0x3a1   : > { %v1096_v19 = vmul.f32 %v2394_v35, %v1048_v56 }
 0x3a2   : > { %v1034_v63 = vsub.f32 %v1002_v18, %v1018_v1 }
 0x3a3   : > { %v956_v23 = vpop.xlane.xlu0 %955  ;;  %v1116_v51 = vmul.f32 %v3302_v12, %v1096_v19 }
 0x3a4   : > { %v2396_v24 = vpop.eup %2395  ;;  %v1066_v31 = vadd.f32 1e-05, %v1034_v63  ;;  %v1001_v43 = vmul.f32 0.0078125, %v956_v23 }
 0x3a5   : > { %v1095_v33 = vmul.f32 %v2396_v24, %v1047_v10  ;;  %v1136_v22 = vadd.f32 %v3307_v21, %v1116_v51 }
 0x3a6   : > { %2397 = vrsqrt.f32 %v1066_v31  ;;  %v1033_v36 = vsub.f32 %v1001_v43, %v1017_v26  ;;  %v922_v37 = vpop.xlane.xlu1 %921 }
 0x3a7   : > { %v914_v42 = vpop.xlane.xlu0 %913  ;;  %v1115_v38 = vmul.f32 %v3302_v12, %v1095_v33  ;;  %v3312_v47 = vmul.f32 0.0078125, %v922_v37  ;;  %v1152_v57 = vmax.f32 %v1136_v22, 0.0 }
 0x3a8   : > { %v1065_v46 = vadd.f32 1e-05, %v1033_v36  ;;  %v3314_v55 = vmul.f32 0.0078125, %v914_v42 }
 0x3a9   : > { %v1135_v53 = vadd.f32 %v3307_v21, %v1115_v38  ;;  %v1024_v62 = vmul.f32 %v3312_v47, %v3312_v47  ;;  %v1056_v38 = vsub.f32 %v3217_v14, %v3312_v47 }
 0x3aa   : > { %2399 = vrsqrt.f32 %v1065_v46  ;;  %v920_v20 = vpop.xlane.xlu1 %919  ;;  %v1020_v0 = vmul.f32 %v3314_v55, %v3314_v55 }
 0x3ab   : > { %v912_v32 = vpop.xlane.xlu0 %911  ;;  %v1151_v52 = vmax.f32 %v1135_v53, 0.0  ;;  %v3319_v29 = vmul.f32 0.0078125, %v920_v20  ;;  %v1052_v20 = vsub.f32 %v3220_v8, %v3314_v55 }
 0x3ac   : > { %v3323_v2 = vmul.f32 0.0078125, %v912_v32 }
 0x3ad   : > { %2146 = vmatprep.mubr.f32.mxu0 %v1151_v52  ;;  %v1023_v11 = vmul.f32 %v3319_v29, %v3319_v29 }
 0x3ae   : > { %2147 = vmatmul.mubr.f32.vlgmr.msra.gmra.mrb[16].mxu0 %v1152_v57  ;;  %v970_v58 = vpop.xlane.xlu1 %969  ;;  %v1019_v56 = vmul.f32 %v3323_v2, %v3323_v2  ;;  %v1051_v8 = vsub.f32 %v3230_v15, %v3323_v2 }
 0x3af   : > { %v1008_v40 = vmul.f32 0.0078125, %v970_v58  ;;  %v962_v60 = vpop.xlane.xlu0 %961 }
 0x3b0   : > { %v2398_v61 = vpop.eup %2397  ;;  %v1004_v3 = vmul.f32 0.0078125, %v962_v60 }
 0x3b1   : > { %v1040_v4 = vsub.f32 %v1008_v40, %v1024_v62  ;;  %v1098_v6 = vmul.f32 %v2398_v61, %v1050_v44  ;;  %v1055_v61 = vsub.f32 %v3227_v5, %v3319_v29 }
 0x3b2   : > { %v1036_v7 = vsub.f32 %v1004_v3, %v1020_v0  ;;  %v968_v9 = vpop.xlane.xlu1 %967 }
 0x3b3   : > { %v1072_v13 = vadd.f32 1e-05, %v1040_v4  ;;  %v1007_v48 = vmul.f32 0.0078125, %v968_v9  ;;  %v960_v30 = vpop.xlane.xlu0 %959  ;;  %v1118_v1 = vmul.f32 %v3302_v12, %v1098_v6 }
 0x3b4   : > { %v2400_v59 = vpop.eup %2399  ;;  %v1068_v16 = vadd.f32 1e-05, %v1036_v7  ;;  %v1003_v35 = vmul.f32 0.0078125, %v960_v30 }
 0x3b5   : > { %2401 = vrsqrt.f32 %v1072_v13  ;;  %v1039_v18 = vsub.f32 %v1007_v48, %v1023_v11  ;;  %v1097_v19 = vmul.f32 %v2400_v59, %v1049_v25  ;;  %v1138_v26 = vadd.f32 %v3307_v21, %v1118_v1 }
 0x3b6   : > { %2403 = vrsqrt.f32 %v1068_v16  ;;  %v1035_v63 = vsub.f32 %v1003_v35, %v1019_v56  ;;  %v926_v28 = vpop.xlane.xlu1 %925 }
 0x3b7   : > { %v1071_v17 = vadd.f32 1e-05, %v1039_v18  ;;  %v918_v10 = vpop.xlane.xlu0 %917  ;;  %v1117_v23 = vmul.f32 %v3302_v12, %v1097_v19  ;;  %v3334_v51 = vmul.f32 0.0078125, %v926_v28  ;;  %v1154_v42 = vmax.f32 %v1138_v26, 0.0 }
 0x3b8   : > { %v1067_v24 = vadd.f32 1e-05, %v1035_v63  ;;  %v3340_v46 = vmul.f32 0.0078125, %v918_v10 }
 0x3b9   : > { %2405 = vrsqrt.f32 %v1071_v17  ;;  %v1137_v31 = vadd.f32 %v3307_v21, %v1117_v23  ;;  %v1026_v32 = vmul.f32 %v3334_v51, %v3334_v51 }
 0x3ba   : > { %2407 = vrsqrt.f32 %v1067_v24  ;;  %v924_v43 = vpop.xlane.xlu1 %923  ;;  %v1022_v55 = vmul.f32 %v3340_v46, %v3340_v46 }
 0x3bb   : > { %v916_v33 = vpop.xlane.xlu0 %915  ;;  %v1153_v36 = vmax.f32 %v1137_v31, 0.0  ;;  %v3346_v52 = vmul.f32 0.0078125, %v924_v43 }
 0x3bc   : > { %v3336_v37 = vmul.f32 0.0078125, %v916_v33  ;;  %v1058_v33 = vsub.f32 %v3249_v34, %v3334_v51 }
 0x3bd   : > { %2149 = vmatprep.mubr.f32.mxu0 %v1153_v36  ;;  %v1025_v6 = vmul.f32 %v3346_v52, %v3346_v52 }
 0x3be   : > { %2150 = vmatmul.mubr.f32.gmra.mrb[18].mxu0 %v1154_v42  ;;  %v974_v22 = vpop.xlane.xlu1 %973  ;;  %v1021_v14 = vmul.f32 %v3336_v37, %v3336_v37 }
 0x3bf   : > { %v2402_v53 = vpop.eup %2401  ;;  %v1010_v57 = vmul.f32 0.0078125, %v974_v22  ;;  %v964_v58 = vpop.xlane.xlu0 %963  ;;  %v1053_v22 = vsub.f32 %v3267_v41, %v3336_v37 }
 0x3c0   : > { %v2404_v44 = vpop.eup %2403  ;;  %v1104_v62 = vmul.f32 %v2402_v53, %v1056_v38  ;;  %v1005_v47 = vmul.f32 0.0078125, %v964_v58 }
 0x3c1   : > { %v1042_v40 = vsub.f32 %v1010_v57, %v1026_v32  ;;  %v1100_v60 = vmul.f32 %v2404_v44, %v1052_v20 }
 0x3c2   : > { %v1037_v0 = vsub.f32 %v1005_v47, %v1021_v14  ;;  %v972_v3 = vpop.xlane.xlu1 %971  ;;  %v1124_v11 = vmul.f32 %v3302_v12, %v1104_v62  ;;  %v1054_v62 = vsub.f32 %v3253_v45, %v3340_v46  ;;  %v1057_v14 = vsub.f32 %v3263_v39, %v3346_v52 }
 0x3c3   : > { %v2406_v4 = vpop.eup %2405  ;;  %v1074_v7 = vadd.f32 1e-05, %v1042_v40  ;;  %v1009_v9 = vmul.f32 0.0078125, %v972_v3  ;;  %v966_v25 = vpop.xlane.xlu0 %965  ;;  %v1120_v15 = vmul.f32 %v3302_v12, %v1100_v60 }
 0x3c4   : > { %v2408_v13 = vpop.eup %2407  ;;  %v1069_v48 = vadd.f32 1e-05, %v1037_v0  ;;  %v1006_v5 = vmul.f32 0.0078125, %v966_v25  ;;  %v1103_v29 = vmul.f32 %v2406_v4, %v1055_v61  ;;  %v1144_v18 = vadd.f32 %v3307_v21, %v1124_v11 }
 0x3c5   : > { %2409 = vrsqrt.f32 %v1074_v7  ;;  %v1041_v2 = vsub.f32 %v1009_v9, %v1025_v6  ;;  %v1099_v30 = vmul.f32 %v2408_v13, %v1051_v8  ;;  %v1140_v28 = vadd.f32 %v3307_v21, %v1120_v15 }
 0x3c6   : > { %2411 = vrsqrt.f32 %v1069_v48  ;;  %v1038_v59 = vsub.f32 %v1006_v5, %v1022_v55  ;;  %v930_v56 = vpop.xlane.xlu1 %929  ;;  %v1123_v16 = vmul.f32 %v3302_v12, %v1103_v29  ;;  %v1160_v31 = vmax.f32 %v1144_v18, 0.0 }
 0x3c7   : > { %v1073_v35 = vadd.f32 1e-05, %v1041_v2  ;;  %v1119_v1 = vmul.f32 %v3302_v12, %v1099_v30  ;;  %v996_v24 = vmul.f32 0.0078125, %v930_v56  ;;  %v1156_v43 = vmax.f32 %v1140_v28, 0.0 }
 0x3c8   : > { %v1070_v19 = vadd.f32 1e-05, %v1038_v59  ;;  %v1143_v63 = vadd.f32 %v3307_v21, %v1123_v16 }
 0x3c9   : > { %2413 = vrsqrt.f32 %v1073_v35  ;;  %v1139_v17 = vadd.f32 %v3307_v21, %v1119_v1  ;;  %v1028_v53 = vmul.f32 %v996_v24, %v996_v24  ;;  %v1060_v29 = vsub.f32 %v3286_v54, %v996_v24 }
 0x3ca   : > { %2415 = vrsqrt.f32 %v1070_v19  ;;  %v928_v10 = vpop.xlane.xlu1 %927  ;;  %v1159_v23 = vmax.f32 %v1143_v63, 0.0 }
 0x3cb   : > { %v1155_v26 = vmax.f32 %v1139_v17, 0.0  ;;  %v995_v36 = vmul.f32 0.0078125, %v928_v10 }
 0x3cc   : > { %2158 = vmatprep.mubr.f32.mxu1 %v1159_v23 }
 0x3cd   : > { %2152 = vmatprep.mubr.f32.mxu0 %v1155_v26  ;;  %2159 = vmatmul.mubr.f32.vlgmr.msra.gmra.mrb[16].mxu1 %v1160_v31  ;;  %v1027_v34 = vmul.f32 %v995_v36, %v995_v36  ;;  %v1059_v1 = vsub.f32 %v3256_v27, %v995_v36 }
 0x3ce   : > { %2153 = vmatmul.mubr.f32.gmra.mrb[20].mxu0 %v1156_v43  ;;  %v978_v42 = vpop.xlane.xlu1 %977 }
 0x3cf   : > { %v2410_v38 = vpop.eup %2409  ;;  %v1012_v20 = vmul.f32 0.0078125, %v978_v42 }
 0x3d0   : > { %v2412_v32 = vpop.eup %2411  ;;  %v1106_v57 = vmul.f32 %v2410_v38, %v1058_v33 }
 0x3d1   : > { %v1044_v58 = vsub.f32 %v1012_v20, %v1028_v53  ;;  %v1101_v44 = vmul.f32 %v2412_v32, %v1053_v22 }
 0x3d2   : > { %v976_v51 = vpop.xlane.xlu1 %975  ;;  %v1126_v41 = vmul.f32 %v3302_v12, %v1106_v57 }
 0x3d3   : > { %v2414_v47 = vpop.eup %2413  ;;  %v1076_v40 = vadd.f32 1e-05, %v1044_v58  ;;  %v1011_v60 = vmul.f32 0.0078125, %v976_v51  ;;  %v1121_v61 = vmul.f32 %v3302_v12, %v1101_v44 }
 0x3d4   : > { %v2416_v37 = vpop.eup %2415  ;;  %v1105_v8 = vmul.f32 %v2414_v47, %v1057_v14  ;;  %v1146_v6 = vadd.f32 %v3307_v21, %v1126_v41 }
 0x3d5   : > { %2417 = vrsqrt.f32 %v1076_v40  ;;  %v1043_v55 = vsub.f32 %v1011_v60, %v1027_v34  ;;  %v1141_v0 = vadd.f32 %v3307_v21, %v1121_v61  ;;  %v1102_v3 = vmul.f32 %v2416_v37, %v1054_v62  ;;  %v3395_v34 = vld [vmem:[%s2953_s24 + $0x6] ss:$0 sm:$0xff] }
 0x3d6   : > { %v934_v45 = vpop.xlane.xlu1 %933  ;;  %v1125_v46 = vmul.f32 %v3302_v12, %v1105_v8  ;;  %v1162_v5 = vmax.f32 %v1146_v6, 0.0 }
 0x3d7   : > { %v1075_v39 = vadd.f32 1e-05, %v1043_v55  ;;  %v1157_v52 = vmax.f32 %v1141_v0, 0.0  ;;  %v1122_v4 = vmul.f32 %v3302_v12, %v1102_v3  ;;  %v998_v30 = vmul.f32 0.0078125, %v934_v45 }
 0x3d8   : > { %v1145_v7 = vadd.f32 %v3307_v21, %v1125_v46 }
 0x3d9   : > { %2419 = vrsqrt.f32 %v1075_v39  ;;  %2155 = vmatprep.mubr.f32.mxu0 %v1157_v52  ;;  %v1142_v9 = vadd.f32 %v3307_v21, %v1122_v4  ;;  %v1030_v63 = vmul.f32 %v998_v30, %v998_v30  ;;  %v1062_v22 = vsub.f32 %v3272_v49, %v998_v30 }
 0x3da   : > { %v932_v25 = vpop.xlane.xlu1 %931  ;;  %v1161_v11 = vmax.f32 %v1145_v7, 0.0 }
 0x3db   : > { %v997_v13 = vmul.f32 0.0078125, %v932_v25  ;;  %v1158_v48 = vmax.f32 %v1142_v9, 0.0 }
 0x3dc   : > { %2161 = vmatprep.mubr.f32.mxu1 %v1161_v11 }
 0x3dd   : > { %2156 = vmatmul.mubr.f32.gmra.mrb[22].mxu0 %v1158_v48  ;;  %2162 = vmatmul.mubr.f32.gmra.mrb[18].mxu1 %v1162_v5  ;;  %v1029_v59 = vmul.f32 %v997_v13, %v997_v13  ;;  %v1061_v36 = vsub.f32 %v3277_v50, %v997_v13 }
 0x3de   : > { %v980_v15 = vpop.xlane.xlu1 %979 }
 0x3df   : > { %v2418_v2 = vpop.eup %2417  ;;  %v1013_v56 = vmul.f32 0.0078125, %v980_v15 }
 0x3e0   : > { %v1108_v16 = vmul.f32 %v2418_v2, %v1060_v29 }
 0x3e1   : > { %v1045_v35 = vsub.f32 %v1013_v56, %v1029_v59 }
 0x3e2   : > { %v982_v18 = vpop.xlane.xlu1 %981  ;;  %v1128_v10 = vmul.f32 %v3302_v12, %v1108_v16 }
 0x3e3   : > { %v2420_v19 = vpop.eup %2419  ;;  %v1077_v28 = vadd.f32 1e-05, %v1045_v35  ;;  %v1014_v17 = vmul.f32 0.0078125, %v982_v18 }
 0x3e4   : > { %v1107_v23 = vmul.f32 %v2420_v19, %v1059_v1  ;;  %v1148_v31 = vadd.f32 %v3307_v21, %v1128_v10 }
 0x3e5   : > { %2421 = vrsqrt.f32 %v1077_v28  ;;  %v1046_v26 = vsub.f32 %v1014_v17, %v1030_v63 }
 0x3e6   : > { %v1127_v54 = vmul.f32 %v3302_v12, %v1107_v23  ;;  %v1164_v27 = vmax.f32 %v1148_v31, 0.0 }
 0x3e7   : > { %v1078_v24 = vadd.f32 1e-05, %v1046_v26 }
 0x3e8   : > { %v1147_v43 = vadd.f32 %v3307_v21, %v1127_v54 }
 0x3e9   : > { %2423 = vrsqrt.f32 %v1078_v24 }
 0x3ea   : > { %v1163_v33 = vmax.f32 %v1147_v43, 0.0 }
 0x3ec   : > { %2164 = vmatprep.mubr.f32.mxu1 %v1163_v33 }
 0x3ed   : > { %2165 = vmatmul.mubr.f32.gmra.mrb[20].mxu1 %v1164_v27 }
 0x3ef   : > { %v2422_v42 = vpop.eup %2421 }
 0x3f0   : > { %v1109_v38 = vmul.f32 %v2422_v42, %v1061_v36 }
 0x3f2   : > { %v1129_v53 = vmul.f32 %v3302_v12, %v1109_v38 }
 0x3f3   : > { %v2424_v20 = vpop.eup %2423 }
 0x3f4   : > { %v1149_v32 = vadd.f32 %v3307_v21, %v1129_v53  ;;  %v1110_v57 = vmul.f32 %v2424_v20, %v1062_v22 }
 0x3f6   : > { %v1165_v58 = vmax.f32 %v1149_v32, 0.0  ;;  %v1130_v44 = vmul.f32 %v3302_v12, %v1110_v57 }
 0x3f8   : > { %2167 = vmatprep.mubr.f32.mxu1 %v1165_v58  ;;  %v1150_v62 = vadd.f32 %v3307_v21, %v1130_v44 }
 0x3fa   : > { %v1166_v14 = vmax.f32 %v1150_v62, 0.0 }
 0x3fc   : > { %2168 = vmatmul.mubr.f32.gmra.mrb[22].mxu1 %v1166_v14 }
 0x481   : > { %v2148_v50 = vpop.f32.mrb[16].mxu0 }
 0x482   : > { %v3398_v51 = vadd.f32 %v2148_v50, %v3395_v34  ;;  %v1257_v49 = vpop.f32.mrb[17].mxu0 }
 0x483   : > { %v3401_v47 = vadd.f32 %v3395_v34, %v1257_v49 }
 0x484   : > { %1338 = vadd.xlane.f32.xlu1 %v3398_v51  ;;  %v1369_v12 = vmul.f32 %v3398_v51, %v3398_v51 }
 0x485   : > { %1336 = vadd.xlane.f32.xlu0 %v3401_v47  ;;  %v1368_v21 = vmul.f32 %v3401_v47, %v3401_v47 }
 0x488   : > { %1386 = vadd.xlane.f32.xlu1 %v1369_v12 }
 0x489   : > { %1384 = vadd.xlane.f32.xlu0 %v1368_v21 }
 0x491   : > { %v2151_v40 = vpop.f32.mrb[18].mxu0 }
 0x492   : > { %v3410_v60 = vadd.f32 %v2151_v40, %v3395_v34  ;;  %v1267_v61 = vpop.f32.mrb[19].mxu0 }
 0x493   : > { %v3413_v41 = vadd.f32 %v3395_v34, %v1267_v61 }
 0x494   : > { %1342 = vadd.xlane.f32.xlu1 %v3410_v60  ;;  %v1371_v37 = vmul.f32 %v3410_v60, %v3410_v60 }
 0x495   : > { %1340 = vadd.xlane.f32.xlu0 %v3413_v41  ;;  %v1370_v8 = vmul.f32 %v3413_v41, %v3413_v41 }
 0x498   : > { %1390 = vadd.xlane.f32.xlu1 %v1371_v37 }
 0x499   : > { %1388 = vadd.xlane.f32.xlu0 %v1370_v8 }
 0x4a0   : > { %v2160_v55 = vpop.f32.mrb[16].mxu1 }
 0x4a1   : > { %v2154_v0 = vpop.f32.mrb[20].mxu0  ;;  %v1297_v3 = vpop.f32.mrb[17].mxu1  ;;  %v3446_v29 = vadd.f32 %v2160_v55, %v3395_v34 }
 0x4a2   : > { %v3422_v45 = vadd.f32 %v2154_v0, %v3395_v34  ;;  %v1277_v46 = vpop.f32.mrb[21].mxu0  ;;  %v3449_v15 = vadd.f32 %v3395_v34, %v1297_v3  ;;  %v3496_v0 = vld [vmem:[%s2953_s24 + $0x7] ss:$0 sm:$0xff] }
 0x4a3   : > { %v3425_v39 = vadd.f32 %v3395_v34, %v1277_v46  ;;  %v1377_v2 = vmul.f32 %v3446_v29, %v3446_v29 }
 0x4a4   : > { %1346 = vadd.xlane.f32.xlu1 %v3422_v45  ;;  %v1373_v52 = vmul.f32 %v3422_v45, %v3422_v45  ;;  %v1376_v30 = vmul.f32 %v3449_v15, %v3449_v15 }
 0x4a5   : > { %1344 = vadd.xlane.f32.xlu0 %v3425_v39  ;;  %v1372_v4 = vmul.f32 %v3425_v39, %v3425_v39 }
 0x4a8   : > { %1394 = vadd.xlane.f32.xlu1 %v1373_v52 }
 0x4a9   : > { %1392 = vadd.xlane.f32.xlu0 %v1372_v4 }
 0x4b0   : > { %v2157_v6 = vpop.f32.mrb[22].mxu0  ;;  %v2163_v7 = vpop.f32.mrb[18].mxu1 }
 0x4b1   : > { %v3434_v9 = vadd.f32 %v2157_v6, %v3395_v34  ;;  %v1287_v25 = vpop.f32.mrb[23].mxu0  ;;  %v1307_v11 = vpop.f32.mrb[19].mxu1  ;;  %v3458_v56 = vadd.f32 %v2163_v7, %v3395_v34  ;;  %v3499_v7 = vld [vmem:[%s2953_s24 + $0x8] ss:$0 sm:$0xff] }
 0x4b2   : > { %v3437_v13 = vadd.f32 %v3395_v34, %v1287_v25  ;;  %v3461_v35 = vadd.f32 %v3395_v34, %v1307_v11 }
 0x4b3   : > { %1350 = vadd.xlane.f32.xlu1 %v3434_v9  ;;  %v1375_v48 = vmul.f32 %v3434_v9, %v3434_v9  ;;  %v1379_v1 = vmul.f32 %v3458_v56, %v3458_v56 }
 0x4b4   : > { %1348 = vadd.xlane.f32.xlu0 %v3437_v13  ;;  %v1374_v5 = vmul.f32 %v3437_v13, %v3437_v13  ;;  %v1378_v18 = vmul.f32 %v3461_v35, %v3461_v35 }
 0x4b7   : > { %1398 = vadd.xlane.f32.xlu1 %v1375_v48 }
 0x4b8   : > { %1396 = vadd.xlane.f32.xlu0 %v1374_v5 }
 0x4bb   : > { %1354 = vadd.xlane.f32.xlu1 %v3446_v29 }
 0x4bc   : > { %1352 = vadd.xlane.f32.xlu0 %v3449_v15 }
 0x4bf   : > { %1402 = vadd.xlane.f32.xlu1 %v1377_v2 }
 0x4c0   : > { %1400 = vadd.xlane.f32.xlu0 %v1376_v30  ;;  %v2166_v59 = vpop.f32.mrb[20].mxu1 }
 0x4c1   : > { %v1317_v16 = vpop.f32.mrb[21].mxu1  ;;  %v3470_v19 = vadd.f32 %v2166_v59, %v3395_v34 }
 0x4c2   : > { %v3473_v63 = vadd.f32 %v3395_v34, %v1317_v16 }
 0x4c3   : > { %1358 = vadd.xlane.f32.xlu1 %v3458_v56  ;;  %v1381_v28 = vmul.f32 %v3470_v19, %v3470_v19 }
 0x4c4   : > { %1356 = vadd.xlane.f32.xlu0 %v3461_v35  ;;  %v1380_v17 = vmul.f32 %v3473_v63, %v3473_v63 }
 0x4c7   : > { %1406 = vadd.xlane.f32.xlu1 %v1379_v1 }
 0x4c8   : > { %1404 = vadd.xlane.f32.xlu0 %v1378_v18 }
 0x4cb   : > { %1362 = vadd.xlane.f32.xlu1 %v3470_v19 }
 0x4cc   : > { %1360 = vadd.xlane.f32.xlu0 %v3473_v63 }
 0x4cf   : > { %1410 = vadd.xlane.f32.xlu1 %v1381_v28  ;;  %v2169_v10 = vpop.f32.mrb[22].mxu1 }
 0x4d0   : > { %v3482_v23 = vadd.f32 %v2169_v10, %v3395_v34  ;;  %1408 = vadd.xlane.f32.xlu0 %v1380_v17  ;;  %v1327_v26 = vpop.f32.mrb[23].mxu1 }
 0x4d1   : > { %v3485_v54 = vadd.f32 %v3395_v34, %v1327_v26 }
 0x4d2   : > { %v1383_v24 = vmul.f32 %v3482_v23, %v3482_v23 }
 0x4d3   : > { %1366 = vadd.xlane.f32.xlu1 %v3482_v23  ;;  %v1382_v31 = vmul.f32 %v3485_v54, %v3485_v54 }
 0x4d4   : > { %1364 = vadd.xlane.f32.xlu0 %v3485_v54 }
 0x4d7   : > { %1414 = vadd.xlane.f32.xlu1 %v1383_v24 }
 0x4d8   : > { %1412 = vadd.xlane.f32.xlu0 %v1382_v31 }
 0x511   : > { %v1339_v43 = vpop.xlane.xlu1 %1338 }
 0x512   : > { %v1417_v33 = vmul.f32 0.015625, %v1339_v43  ;;  %v1337_v27 = vpop.xlane.xlu0 %1336 }
 0x513   : > { %v1416_v36 = vmul.f32 0.015625, %v1337_v27 }
 0x514   : > { %v1449_v38 = vmul.f32 %v1417_v33, %v1417_v33  ;;  %v1481_v12 = vsub.f32 %v3398_v51, %v1417_v33 }
 0x515   : > { %v1387_v42 = vpop.xlane.xlu1 %1386  ;;  %v1448_v20 = vmul.f32 %v1416_v36, %v1416_v36  ;;  %v1480_v61 = vsub.f32 %v3401_v47, %v1416_v36 }
 0x516   : > { %v1433_v22 = vmul.f32 0.015625, %v1387_v42  ;;  %v1385_v53 = vpop.xlane.xlu0 %1384 }
 0x517   : > { %v1432_v32 = vmul.f32 0.015625, %v1385_v53 }
 0x518   : > { %v1465_v57 = vsub.f32 %v1433_v22, %v1449_v38 }
 0x519   : > { %v1464_v58 = vsub.f32 %v1432_v32, %v1448_v20 }
 0x51a   : > { %v1497_v44 = vadd.f32 1e-05, %v1465_v57 }
 0x51b   : > { %v1496_v62 = vadd.f32 1e-05, %v1464_v58 }
 0x51c   : > { %2425 = vrsqrt.f32 %v1497_v44 }
 0x51d   : > { %2427 = vrsqrt.f32 %v1496_v62 }
 0x521   : > { %v1343_v14 = vpop.xlane.xlu1 %1342 }
 0x522   : > { %v1419_v34 = vmul.f32 0.015625, %v1343_v14  ;;  %v1341_v50 = vpop.xlane.xlu0 %1340 }
 0x523   : > { %v1418_v49 = vmul.f32 0.015625, %v1341_v50 }
 0x524   : > { %v1451_v37 = vmul.f32 %v1419_v34, %v1419_v34  ;;  %v1483_v10 = vsub.f32 %v3410_v60, %v1419_v34 }
 0x525   : > { %v1391_v21 = vpop.xlane.xlu1 %1390  ;;  %v1450_v46 = vmul.f32 %v1418_v49, %v1418_v49  ;;  %v1482_v31 = vsub.f32 %v3413_v41, %v1418_v49 }
 0x526   : > { %v2426_v40 = vpop.eup %2425  ;;  %v1435_v8 = vmul.f32 0.015625, %v1391_v21  ;;  %v1389_v55 = vpop.xlane.xlu0 %1388 }
 0x527   : > { %v2428_v3 = vpop.eup %2427  ;;  %v1434_v52 = vmul.f32 0.015625, %v1389_v55  ;;  %v1529_v4 = vmul.f32 %v2426_v40, %v1481_v12 }
 0x528   : > { %v1467_v6 = vsub.f32 %v1435_v8, %v1451_v37  ;;  %v1528_v25 = vmul.f32 %v2428_v3, %v1480_v61 }
 0x529   : > { %v1466_v11 = vsub.f32 %v1434_v52, %v1450_v46  ;;  %v1549_v51 = vmul.f32 %v3496_v0, %v1529_v4 }
 0x52a   : > { %v1499_v48 = vadd.f32 1e-05, %v1467_v6  ;;  %v1548_v5 = vmul.f32 %v3496_v0, %v1528_v25 }
 0x52b   : > { %v1498_v47 = vadd.f32 1e-05, %v1466_v11  ;;  %v3504_v2 = vadd.f32 %v3499_v7, %v1549_v51 }
 0x52c   : > { %2429 = vrsqrt.f32 %v1499_v48  ;;  %v3507_v30 = vadd.f32 %v3499_v7, %v1548_v5 }
 0x52d   : > { %2431 = vrsqrt.f32 %v1498_v47  ;;  %v1585_v59 = vmul.f32 %v3504_v2, %v3504_v2 }
 0x52e   : > { %v1584_v16 = vmul.f32 %v3507_v30, %v3507_v30 }
 0x52f   : > { %1602 = vadd.xlane.f32.xlu1 %v1585_v59 }
 0x530   : > { %1600 = vadd.xlane.f32.xlu0 %v1584_v16 }
 0x531   : > { %v1347_v1 = vpop.xlane.xlu1 %1346 }
 0x532   : > { %v1421_v18 = vmul.f32 0.015625, %v1347_v1  ;;  %v1345_v28 = vpop.xlane.xlu0 %1344 }
 0x533   : > { %v1420_v17 = vmul.f32 0.015625, %v1345_v28 }
 0x534   : > { %v1453_v43 = vmul.f32 %v1421_v18, %v1421_v18  ;;  %v1485_v61 = vsub.f32 %v3422_v45, %v1421_v18 }
 0x535   : > { %v1395_v26 = vpop.xlane.xlu1 %1394  ;;  %v1452_v42 = vmul.f32 %v1420_v17, %v1420_v17  ;;  %v1484_v46 = vsub.f32 %v3425_v39, %v1420_v17 }
 0x536   : > { %v2430_v24 = vpop.eup %2429  ;;  %v1437_v33 = vmul.f32 0.015625, %v1395_v26  ;;  %v1393_v27 = vpop.xlane.xlu0 %1392 }
 0x537   : > { %v2432_v36 = vpop.eup %2431  ;;  %v1436_v38 = vmul.f32 0.015625, %v1393_v27  ;;  %v1531_v22 = vmul.f32 %v2430_v24, %v1483_v10 }
 0x538   : > { %v1469_v53 = vsub.f32 %v1437_v33, %v1453_v43  ;;  %v1530_v20 = vmul.f32 %v2432_v36, %v1482_v31 }
 0x539   : > { %v1468_v32 = vsub.f32 %v1436_v38, %v1452_v42  ;;  %v1551_v57 = vmul.f32 %v3496_v0, %v1531_v22 }
 0x53a   : > { %v1501_v58 = vadd.f32 1e-05, %v1469_v53  ;;  %v1550_v44 = vmul.f32 %v3496_v0, %v1530_v20 }
 0x53b   : > { %v1500_v60 = vadd.f32 1e-05, %v1468_v32  ;;  %v3518_v62 = vadd.f32 %v3499_v7, %v1551_v57 }
 0x53c   : > { %2433 = vrsqrt.f32 %v1501_v58  ;;  %v3521_v41 = vadd.f32 %v3499_v7, %v1550_v44 }
 0x53d   : > { %2435 = vrsqrt.f32 %v1500_v60  ;;  %v1587_v14 = vmul.f32 %v3518_v62, %v3518_v62 }
 0x53e   : > { %v1586_v34 = vmul.f32 %v3521_v41, %v3521_v41 }
 0x53f   : > { %1606 = vadd.xlane.f32.xlu1 %v1587_v14 }
 0x540   : > { %1604 = vadd.xlane.f32.xlu0 %v1586_v34  ;;  %v1351_v50 = vpop.xlane.xlu1 %1350 }
 0x541   : > { %v1423_v49 = vmul.f32 0.015625, %v1351_v50  ;;  %v1349_v12 = vpop.xlane.xlu0 %1348 }
 0x542   : > { %v1422_v21 = vmul.f32 0.015625, %v1349_v12 }
 0x543   : > { %v1455_v37 = vmul.f32 %v1423_v49, %v1423_v49  ;;  %v1487_v44 = vsub.f32 %v3434_v9, %v1423_v49 }
 0x544   : > { %v1399_v40 = vpop.xlane.xlu1 %1398  ;;  %v1454_v52 = vmul.f32 %v1422_v21, %v1422_v21  ;;  %v1486_v34 = vsub.f32 %v3437_v13, %v1422_v21 }
 0x545   : > { %v1439_v8 = vmul.f32 0.015625, %v1399_v40  ;;  %v1397_v55 = vpop.xlane.xlu0 %1396 }
 0x546   : > { %v2434_v3 = vpop.eup %2433  ;;  %v1438_v4 = vmul.f32 0.015625, %v1397_v55 }
 0x547   : > { %v2436_v6 = vpop.eup %2435  ;;  %v1471_v25 = vsub.f32 %v1439_v8, %v1455_v37  ;;  %v1533_v11 = vmul.f32 %v2434_v3, %v1485_v61 }
 0x548   : > { %v1470_v51 = vsub.f32 %v1438_v4, %v1454_v52  ;;  %v1355_v48 = vpop.xlane.xlu1 %1354  ;;  %v1532_v5 = vmul.f32 %v2436_v6, %v1484_v46 }
 0x549   : > { %v1503_v47 = vadd.f32 1e-05, %v1471_v25  ;;  %v3529_v59 = vmul.f32 0.015625, %v1355_v48  ;;  %v1353_v16 = vpop.xlane.xlu0 %1352  ;;  %v1553_v45 = vmul.f32 %v3496_v0, %v1533_v11 }
 0x54a   : > { %v1502_v1 = vadd.f32 1e-05, %v1470_v51  ;;  %v3532_v18 = vmul.f32 0.015625, %v1353_v16  ;;  %v1552_v28 = vmul.f32 %v3496_v0, %v1532_v5 }
 0x54b   : > { %2437 = vrsqrt.f32 %v1503_v47  ;;  %v3536_v39 = vadd.f32 %v3499_v7, %v1553_v45  ;;  %v1457_v26 = vmul.f32 %v3529_v59, %v3529_v59  ;;  %v1489_v5 = vsub.f32 %v3446_v29, %v3529_v59 }
 0x54c   : > { %2439 = vrsqrt.f32 %v1502_v1  ;;  %v1403_v17 = vpop.xlane.xlu1 %1402  ;;  %v3539_v10 = vadd.f32 %v3499_v7, %v1552_v28  ;;  %v1456_v33 = vmul.f32 %v3532_v18, %v3532_v18  ;;  %v1488_v1 = vsub.f32 %v3449_v15, %v3532_v18 }
 0x54d   : > { %v1441_v24 = vmul.f32 0.015625, %v1403_v17  ;;  %v1401_v31 = vpop.xlane.xlu0 %1400  ;;  %v1589_v43 = vmul.f32 %v3536_v39, %v3536_v39 }
 0x54e   : > { %v1440_v27 = vmul.f32 0.015625, %v1401_v31  ;;  %v1588_v36 = vmul.f32 %v3539_v10, %v3539_v10 }
 0x54f   : > { %v1473_v42 = vsub.f32 %v1441_v24, %v1457_v26  ;;  %1610 = vadd.xlane.f32.xlu1 %v1589_v43 }
 0x550   : > { %v1472_v38 = vsub.f32 %v1440_v27, %v1456_v33  ;;  %1608 = vadd.xlane.f32.xlu0 %v1588_v36  ;;  %v1359_v22 = vpop.xlane.xlu1 %1358 }
 0x551   : > { %v1505_v53 = vadd.f32 1e-05, %v1473_v42  ;;  %v3549_v20 = vmul.f32 0.015625, %v1359_v22  ;;  %v1357_v32 = vpop.xlane.xlu0 %1356 }
 0x552   : > { %v1504_v57 = vadd.f32 1e-05, %v1472_v38  ;;  %v3551_v58 = vmul.f32 0.015625, %v1357_v32 }
 0x553   : > { %2441 = vrsqrt.f32 %v1505_v53  ;;  %v1459_v50 = vmul.f32 %v3549_v20, %v3549_v20 }
 0x554   : > { %2443 = vrsqrt.f32 %v1504_v57  ;;  %v1407_v60 = vpop.xlane.xlu1 %1406  ;;  %v1458_v37 = vmul.f32 %v3551_v58, %v3551_v58 }
 0x555   : > { %v2438_v14 = vpop.eup %2437  ;;  %v1443_v12 = vmul.f32 0.015625, %v1407_v60  ;;  %v1405_v40 = vpop.xlane.xlu0 %1404 }
 0x556   : > { %v2440_v61 = vpop.eup %2439  ;;  %v1442_v8 = vmul.f32 0.015625, %v1405_v40  ;;  %v1535_v55 = vmul.f32 %v2438_v14, %v1487_v44  ;;  %v1491_v14 = vsub.f32 %v3458_v56, %v3549_v20  ;;  %v1490_v40 = vsub.f32 %v3461_v35, %v3551_v58 }
 0x557   : > { %v1475_v3 = vsub.f32 %v1443_v12, %v1459_v50  ;;  %v1534_v46 = vmul.f32 %v2440_v61, %v1486_v34 }
 0x558   : > { %v1474_v52 = vsub.f32 %v1442_v8, %v1458_v37  ;;  %v1363_v9 = vpop.xlane.xlu1 %1362  ;;  %v1555_v49 = vmul.f32 %v3496_v0, %v1535_v55 }
 0x559   : > { %v1507_v4 = vadd.f32 1e-05, %v1475_v3  ;;  %v3560_v6 = vmul.f32 0.015625, %v1363_v9  ;;  %v1361_v13 = vpop.xlane.xlu0 %1360  ;;  %v1554_v21 = vmul.f32 %v3496_v0, %v1534_v46 }
 0x55a   : > { %v1506_v25 = vadd.f32 1e-05, %v1474_v52  ;;  %v3563_v11 = vmul.f32 0.015625, %v1361_v13  ;;  %v3566_v51 = vadd.f32 %v3499_v7, %v1555_v49 }
 0x55b   : > { %2445 = vrsqrt.f32 %v1507_v4  ;;  %v3569_v48 = vadd.f32 %v3499_v7, %v1554_v21  ;;  %v1461_v28 = vmul.f32 %v3560_v6, %v3560_v6 }
 0x55c   : > { %2447 = vrsqrt.f32 %v1506_v25  ;;  %v1411_v47 = vpop.xlane.xlu1 %1410  ;;  %v1591_v16 = vmul.f32 %v3566_v51, %v3566_v51  ;;  %v1460_v29 = vmul.f32 %v3563_v11, %v3563_v11 }
 0x55d   : > { %v2442_v45 = vpop.eup %2441  ;;  %v1445_v17 = vmul.f32 0.015625, %v1411_v47  ;;  %v1409_v26 = vpop.xlane.xlu0 %1408  ;;  %v1590_v24 = vmul.f32 %v3569_v48, %v3569_v48 }
 0x55e   : > { %v2444_v31 = vpop.eup %2443  ;;  %v1444_v59 = vmul.f32 0.015625, %v1409_v26  ;;  %1614 = vadd.xlane.f32.xlu1 %v1591_v16  ;;  %v1537_v43 = vmul.f32 %v2442_v45, %v1489_v5  ;;  %v1493_v5 = vsub.f32 %v3470_v19, %v3560_v6  ;;  %v1492_v45 = vsub.f32 %v3473_v63, %v3563_v11 }
 0x55f   : > { %v1477_v33 = vsub.f32 %v1445_v17, %v1461_v28  ;;  %1612 = vadd.xlane.f32.xlu0 %v1590_v24  ;;  %v1536_v27 = vmul.f32 %v2444_v31, %v1488_v1 }
 0x560   : > { %v1476_v36 = vsub.f32 %v1444_v59, %v1460_v29  ;;  %v1367_v15 = vpop.xlane.xlu1 %1366  ;;  %v1557_v18 = vmul.f32 %v3496_v0, %v1537_v43 }
 0x561   : > { %v1509_v42 = vadd.f32 1e-05, %v1477_v33  ;;  %v1431_v38 = vmul.f32 0.015625, %v1367_v15  ;;  %v1365_v22 = vpop.xlane.xlu0 %1364  ;;  %v1556_v53 = vmul.f32 %v3496_v0, %v1536_v27 }
 0x562   : > { %v1508_v32 = vadd.f32 1e-05, %v1476_v36  ;;  %v1430_v57 = vmul.f32 0.015625, %v1365_v22  ;;  %v3586_v44 = vadd.f32 %v3499_v7, %v1557_v18 }
 0x563   : > { %2449 = vrsqrt.f32 %v1509_v42  ;;  %v3589_v60 = vadd.f32 %v3499_v7, %v1556_v53  ;;  %v1463_v61 = vmul.f32 %v1431_v38, %v1431_v38  ;;  %v1495_v63 = vsub.f32 %v3482_v23, %v1431_v38 }
 0x564   : > { %2451 = vrsqrt.f32 %v1508_v32  ;;  %v1415_v34 = vpop.xlane.xlu1 %1414  ;;  %v1593_v50 = vmul.f32 %v3586_v44, %v3586_v44  ;;  %v1462_v46 = vmul.f32 %v1430_v57, %v1430_v57  ;;  %v1494_v59 = vsub.f32 %v3485_v54, %v1430_v57 }
 0x565   : > { %v2446_v12 = vpop.eup %2445  ;;  %v1447_v37 = vmul.f32 0.015625, %v1415_v34  ;;  %v1413_v8 = vpop.xlane.xlu0 %1412  ;;  %v1592_v55 = vmul.f32 %v3589_v60, %v3589_v60 }
 0x566   : > { %v2448_v3 = vpop.eup %2447  ;;  %v1446_v52 = vmul.f32 0.015625, %v1413_v8  ;;  %1618 = vadd.xlane.f32.xlu1 %v1593_v50  ;;  %v1539_v56 = vmul.f32 %v2446_v12, %v1491_v14 }
 0x567   : > { %v1479_v20 = vsub.f32 %v1447_v37, %v1463_v61  ;;  %1616 = vadd.xlane.f32.xlu0 %v1592_v55  ;;  %v1538_v9 = vmul.f32 %v2448_v3, %v1490_v40 }
 0x568   : > { %v1478_v49 = vsub.f32 %v1446_v52, %v1462_v46  ;;  %v1559_v4 = vmul.f32 %v3496_v0, %v1539_v56 }
 0x569   : > { %v1511_v13 = vadd.f32 1e-05, %v1479_v20  ;;  %v1558_v35 = vmul.f32 %v3496_v0, %v1538_v9 }
 0x56a   : > { %v1510_v58 = vadd.f32 1e-05, %v1478_v49  ;;  %v3602_v21 = vadd.f32 %v3499_v7, %v1559_v4 }
 0x56b   : > { %2453 = vrsqrt.f32 %v1511_v13  ;;  %v3605_v25 = vadd.f32 %v3499_v7, %v1558_v35 }
 0x56c   : > { %2455 = vrsqrt.f32 %v1510_v58  ;;  %v1595_v47 = vmul.f32 %v3602_v21, %v3602_v21 }
 0x56d   : > { %v2450_v16 = vpop.eup %2449  ;;  %v1594_v1 = vmul.f32 %v3605_v25, %v3605_v25 }
 0x56e   : > { %v2452_v28 = vpop.eup %2451  ;;  %1622 = vadd.xlane.f32.xlu1 %v1595_v47  ;;  %v1541_v17 = vmul.f32 %v2450_v16, %v1493_v5 }
 0x56f   : > { %1620 = vadd.xlane.f32.xlu0 %v1594_v1  ;;  %v1540_v26 = vmul.f32 %v2452_v28, %v1492_v45 }
 0x570   : > { %v1561_v24 = vmul.f32 %v3496_v0, %v1541_v17 }
 0x571   : > { %v1560_v19 = vmul.f32 %v3496_v0, %v1540_v26 }
 0x572   : > { %v3618_v6 = vadd.f32 %v3499_v7, %v1561_v24 }
 0x573   : > { %v3621_v31 = vadd.f32 %v3499_v7, %v1560_v19 }
 0x574   : > { %v1597_v11 = vmul.f32 %v3618_v6, %v3618_v6 }
 0x575   : > { %v2454_v29 = vpop.eup %2453  ;;  %v1596_v43 = vmul.f32 %v3621_v31, %v3621_v31 }
 0x576   : > { %v2456_v33 = vpop.eup %2455  ;;  %1626 = vadd.xlane.f32.xlu1 %v1597_v11  ;;  %v1543_v27 = vmul.f32 %v2454_v29, %v1495_v63 }
 0x577   : > { %1624 = vadd.xlane.f32.xlu0 %v1596_v43  ;;  %v1542_v36 = vmul.f32 %v2456_v33, %v1494_v59 }
 0x578   : > { %v1563_v15 = vmul.f32 %v3496_v0, %v1543_v27 }
 0x579   : > { %v1562_v18 = vmul.f32 %v3496_v0, %v1542_v36 }
 0x57a   : > { %v3632_v23 = vadd.f32 %v3499_v7, %v1563_v15 }
 0x57b   : > { %v3635_v42 = vadd.f32 %v3499_v7, %v1562_v18 }
 0x57c   : > { %v1599_v54 = vmul.f32 %v3632_v23, %v3632_v23 }
 0x57d   : > { %v1598_v38 = vmul.f32 %v3635_v42, %v3635_v42 }
 0x57e   : > { %1630 = vadd.xlane.f32.xlu1 %v1599_v54 }
 0x57f   : > { %1628 = vadd.xlane.f32.xlu0 %v1598_v38 }
 0x5bc   : > { %v1603_v22 = vpop.xlane.xlu1 %1602 }
 0x5bd   : > { %v1633_v53 = vmax.f32 %v1603_v22, 1e-24  ;;  %v1601_v32 = vpop.xlane.xlu0 %1600 }
 0x5be   : > { %v1632_v57 = vmax.f32 %v1601_v32, 1e-24 }
 0x5bf   : > { %2457 = vrsqrt.f32 %v1633_v53 }
 0x5c0   : > { %2459 = vrsqrt.f32 %v1632_v57 }
 0x5c9   : > { %v2458_v0 = vpop.eup %2457 }
 0x5ca   : > { %v2460_v14 = vpop.eup %2459  ;;  %v1665_v34 = vmul.f32 %v2458_v0, %v3504_v2 }
 0x5cb   : > { %v1664_v7 = vmul.f32 %v2460_v14, %v3507_v30 }
 0x5cc   : > { %1681 = vst [vmem:[%s3645_s5 + $0x8] sm:$0xff] %v1665_v34  ;;  %v1607_v50 = vpop.xlane.xlu1 %1606 }
 0x5cd   : > { %1680 = vst [vmem:[%s3645_s5] sm:$0xff] %v1664_v7  ;;  %v1635_v12 = vmax.f32 %v1607_v50, 1e-24  ;;  %v1605_v40 = vpop.xlane.xlu0 %1604 }
 0x5ce   : > { %v1634_v61 = vmax.f32 %v1605_v40, 1e-24 }
 0x5cf   : > { %2461 = vrsqrt.f32 %v1635_v12 }
 0x5d0   : > { %2463 = vrsqrt.f32 %v1634_v61 }
 0x5d9   : > { %v2462_v37 = vpop.eup %2461 }
 0x5da   : > { %v2464_v8 = vpop.eup %2463  ;;  %v1667_v2 = vmul.f32 %v2462_v37, %v3518_v62 }
 0x5db   : > { %v1666_v30 = vmul.f32 %v2464_v8, %v3521_v41 }
 0x5dc   : > { %1683 = vst [vmem:[%s3645_s5 + $0x18] sm:$0xff] %v1667_v2  ;;  %v1611_v55 = vpop.xlane.xlu1 %1610 }
 0x5dd   : > { %1682 = vst [vmem:[%s3645_s5 + $0x10] sm:$0xff] %v1666_v30  ;;  %v1637_v3 = vmax.f32 %v1611_v55, 1e-24  ;;  %v1609_v46 = vpop.xlane.xlu0 %1608 }
 0x5de   : > { %v1636_v52 = vmax.f32 %v1609_v46, 1e-24 }
 0x5df   : > { %2465 = vrsqrt.f32 %v1637_v3 }
 0x5e0   : > { %2467 = vrsqrt.f32 %v1636_v52 }
 0x5e9   : > { %v2466_v56 = vpop.eup %2465 }
 0x5ea   : > { %v2468_v20 = vpop.eup %2467  ;;  %v1669_v9 = vmul.f32 %v2466_v56, %v3536_v39 }
 0x5eb   : > { %v1668_v49 = vmul.f32 %v2468_v20, %v3539_v10  ;;  %v1615_v4 = vpop.xlane.xlu1 %1614 }
 0x5ec   : > { %1685 = vst [vmem:[%s3645_s5 + $0x28] sm:$0xff] %v1669_v9  ;;  %v1639_v62 = vmax.f32 %v1615_v4, 1e-24  ;;  %v1613_v41 = vpop.xlane.xlu0 %1612 }
 0x5ed   : > { %1684 = vst [vmem:[%s3645_s5 + $0x20] sm:$0xff] %v1668_v49  ;;  %v1638_v13 = vmax.f32 %v1613_v41, 1e-24 }
 0x5ee   : > { %2469 = vrsqrt.f32 %v1639_v62 }
 0x5ef   : > { %2471 = vrsqrt.f32 %v1638_v13 }
 0x5f3   : > { %v1619_v35 = vpop.xlane.xlu1 %1618 }
 0x5f4   : > { %v1641_v58 = vmax.f32 %v1619_v35, 1e-24  ;;  %v1617_v5 = vpop.xlane.xlu0 %1616 }
 0x5f5   : > { %v1640_v47 = vmax.f32 %v1617_v5, 1e-24 }
 0x5f6   : > { %2473 = vrsqrt.f32 %v1641_v58 }
 0x5f7   : > { %2475 = vrsqrt.f32 %v1640_v47 }
 0x5f8   : > { %v2470_v16 = vpop.eup %2469 }
 0x5f9   : > { %v2472_v39 = vpop.eup %2471  ;;  %v1671_v10 = vmul.f32 %v2470_v16, %v3566_v51 }
 0x5fa   : > { %v1670_v45 = vmul.f32 %v2472_v39, %v3569_v48 }
 0x5fb   : > { %1687 = vst [vmem:[%s3645_s5 + $0x38] sm:$0xff] %v1671_v10  ;;  %v1623_v1 = vpop.xlane.xlu1 %1622 }
 0x5fc   : > { %1686 = vst [vmem:[%s3645_s5 + $0x30] sm:$0xff] %v1670_v45  ;;  %v1643_v28 = vmax.f32 %v1623_v1, 1e-24  ;;  %v1621_v17 = vpop.xlane.xlu0 %1620 }
 0x5fd   : > { %v1642_v26 = vmax.f32 %v1621_v17, 1e-24 }
 0x5fe   : > { %2477 = vrsqrt.f32 %v1643_v28 }
 0x5ff   : > { %2479 = vrsqrt.f32 %v1642_v26 }
 0x600   : > { %v2474_v24 = vpop.eup %2473 }
 0x601   : > { %v2476_v19 = vpop.eup %2475  ;;  %v1673_v63 = vmul.f32 %v2474_v24, %v3586_v44 }
 0x602   : > { %v1672_v11 = vmul.f32 %v2476_v19, %v3589_v60 }
 0x603   : > { %1689 = vst [vmem:[%s3645_s5 + $0x48] sm:$0xff] %v1673_v63  ;;  %v1627_v51 = vpop.xlane.xlu1 %1626 }
 0x604   : > { %1688 = vst [vmem:[%s3645_s5 + $0x40] sm:$0xff] %v1672_v11  ;;  %v1645_v48 = vmax.f32 %v1627_v51, 1e-24  ;;  %v1625_v29 = vpop.xlane.xlu0 %1624 }
 0x605   : > { %v1644_v59 = vmax.f32 %v1625_v29, 1e-24 }
 0x606   : > { %2481 = vrsqrt.f32 %v1645_v48 }
 0x607   : > { %2483 = vrsqrt.f32 %v1644_v59 }
 0x608   : > { %v2478_v43 = vpop.eup %2477 }
 0x609   : > { %v2480_v33 = vpop.eup %2479  ;;  %v1675_v27 = vmul.f32 %v2478_v43, %v3602_v21 }
 0x60a   : > { %v1674_v44 = vmul.f32 %v2480_v33, %v3605_v25 }
 0x60b   : > { %1691 = vst [vmem:[%s3645_s5 + $0x58] sm:$0xff] %v1675_v27  ;;  %v1631_v60 = vpop.xlane.xlu1 %1630 }
 0x60c   : > { %1690 = vst [vmem:[%s3645_s5 + $0x50] sm:$0xff] %v1674_v44  ;;  %v1647_v36 = vmax.f32 %v1631_v60, 1e-24  ;;  %v1629_v15 = vpop.xlane.xlu0 %1628 }
 0x60d   : > { %v1646_v18 = vmax.f32 %v1629_v15, 1e-24 }
 0x60e   : > { %2485 = vrsqrt.f32 %v1647_v36 }
 0x60f   : > { %2487 = vrsqrt.f32 %v1646_v18 }
 0x610   : > { %v2482_v54 = vpop.eup %2481 }
 0x611   : > { %v2484_v38 = vpop.eup %2483  ;;  %v1677_v22 = vmul.f32 %v2482_v54, %v3618_v6 }
 0x612   : > { %v1676_v21 = vmul.f32 %v2484_v38, %v3621_v31 }
 0x613   : > { %1693 = vst [vmem:[%s3645_s5 + $0x68] sm:$0xff] %v1677_v22 }
 0x614   : > { %1692 = vst [vmem:[%s3645_s5 + $0x60] sm:$0xff] %v1676_v21 }
 0x618   : > { %v2486_v25 = vpop.eup %2485 }
 0x619   : > { %v2488_v53 = vpop.eup %2487  ;;  %v1679_v32 = vmul.f32 %v2486_v25, %v3632_v23 }
 0x61a   : > { %v1678_v6 = vmul.f32 %v2488_v53, %v3635_v42 }
 0x61b   : > { %1695 = vst [vmem:[%s3645_s5 + $0x78] sm:$0xff] %v1679_v32 }
 0x61c   : > { %1694 = vst [vmem:[%s3645_s5 + $0x70] sm:$0xff] %v1678_v6 }
 0x61d   : > { %2592 = shalt.err (!%p2589_p13)
}
 0x61e   : > { %s2593_s21 = scalar_lea.hbm %s3679_s10, 2048  ;;  %s2597_s11 = scalar_lea.hbm %s3736_s3, 4096 }
 0x61f   : > { %p2594_p11 = scmp.ne.s32.totalorder %s3679_s10, %s2593_s21  ;;  %p2598_p7 = scmp.lt.u32.totalorder %s3679_s10, %s3736_s3 }
 0x620   : > { %p2599_p4 = scmp.lt.u32.totalorder %s2597_s11, %s2593_s21  ;;  %p2601_p0 = scmp.lt.u32.totalorder %s2593_s21, %s3679_s10 }
 0x621   : > { %p2595_p2 = pnand %p2594_p11, %p3762_p10 }
 0x622   : > { %p2600_p3 = por %p2599_p4, %p2598_p7 }
 0x623   : > { %p2596_p5 = pneg %p2595_p2 }
 0x624   : > { %p2602_p8 = por %p2601_p0, %p2600_p3 }
 0x626   : > { %p2603_p9 = pnand %p2602_p8, %p2596_p5 }
 0x628   : > { %2606 = shalt.err (!%p2603_p9)
}
 0x629   : > { %s2673_s6 = smov 128   ;;  %s2674_s18 = smov 8  }
 0x62a   : > { %2291 = dma.vmem_to_hbm [thread:$0]  (%p3762_p10), %s3681_s28, 2048, %s3679_s10, %s1697_s15, %s2673_s6, %s2673_s6, %s2674_s18  }
 0x62b PF: > { %s1727_s24 = sand.u32 1, %s2645_s12   ;;  %p3763_p12 = scmp.ne.s32.totalorder %s3750_s27, 0 }
 0x62c   : > { %p3764_p1 = scmp.ge.s32.totalorder %s2665_s17, 2  ;;  %s1728_s5 = scalar_lea.sflag [#allocation4], %s1727_s24 }
 0x62e   : > { %p2304_p6 = pnand %p3764_p1, %p3763_p12 }
 0x630   : > { %2640 = dma.done.wait (!%p2304_p6), %s1728_s5, 2048  }
 0x631   : > { %2642 = vsyncadd (!%p2304_p6), %s1728_s5, 4294965248  ;;  %s22_s17 = sadd.s32 1, %s2665_s17   ;;  %s3765_s25 = sld [smem:[#allocation12_spill]] }
 0x632   : > { %p19_p13 = scmp.ge.s32.totalorder %s22_s17, 4   ;;  %s3766_s12 = smov %s2649_s13 }
 0x633   : > { %s3767_s13 = smov %s2653_s14  ;;  %s3768_s14 = smov %s2755_s26 }
 0x634   : > { %s3769_s15 = smov %s2661_s16  ;;  %21 = sbr.rel (!%p19_p13) target bundleno = 11 (0xb), region = 103 }
 0x637   : > { %s3770_s16 = smov %s3765_s25 }
 0x63b   :  { %1733 = vsyncpa [#allocation3], 1 }
 0x63c   :  { %1735 = vsyncpa [#allocation3 + $0x1], 1 }
 0x63d   :  { %1736 = vsyncpa [#allocation6], 1 }
 0x63e   :  { %1738 = vsyncpa [#allocation6 + $0x1], 1 }
 0x63f   :  { %1739 = vsyncpa [#allocation4], 1 }
 0x640   :  { %1741 = vsyncpa [#allocation4 + $0x1], 1 }

</bundles_post_ra>
